<compile_context>
chip_gen: v6e
topology: v6e:2x2x1
jax: 0.10.0
libtpu: 0.0.40
codegen_flags: <defaults>
</compile_context>

<pallas_src>
import functools
import math

import jax
import jax.numpy as jnp
from jax import lax
from jax.experimental import pallas as pl
from jax.experimental.pallas import tpu as pltpu


def _qkv_proj_kernel(x_ref, w_ref, b_ref, q_ref, k_ref, v_ref, *,
                     num_heads, head_dim_p):
    """One fused (tq,E)@(E,3*E_pad) MXU dot; outputs head-leading q/k/v.

    x_ref: (1, tq, E)       bf16
    w_ref: (E, 3*E_pad)     bf16, columns ordered [tensor(q,k,v)][head][dim],
                            q columns pre-scaled by 1/sqrt(Dh)
    b_ref: (1, 3*E_pad)     f32
    q/k/v_ref: (1, H, tq, Dh_pad) bf16
    """
    H, Dp = num_heads, head_dim_p
    Ep = H * Dp
    x = x_ref[0]                                                  # (tq, E) bf16
    qkv = (jnp.dot(x, w_ref[...], preferred_element_type=jnp.float32)
           + b_ref[...]).astype(q_ref.dtype)                      # (tq, 3*Ep) bf16
    # One-time relayout to head-on-leading-dim (paid once here, not per q-tile
    # per head in the attention kernel).
    for h in range(H):
        lo = h * Dp
        q_ref[0, h] = qkv[:, lo:lo + Dp]
        k_ref[0, h] = qkv[:, Ep + lo:Ep + lo + Dp]
        v_ref[0, h] = qkv[:, 2 * Ep + lo:2 * Ep + lo + Dp]


def _attention_kernel(q_ref, k_ref, v_ref, mask_ref, wout_ref, bout_ref,
                      out_ref, *rest, write_attn):
    """Per (batch, q-tile, head) grid step: masked softmax + per-head out-proj.

    q_ref:    (1, 1, tq, Dh_pad)    bf16, pre-scaled by 1/sqrt(Dh)
    k_ref:    (1, 1, S_pad, Dh_pad) bf16
    v_ref:    (1, 1, S_pad, Dh_pad) bf16
    mask_ref: (1, 1, S_pad)         f32 (1 keep / 0 pad)
    wout_ref: (1, Dh_pad, E)        bf16 (rows of W_out for this head)
    bout_ref: (1, E)                f32
    out_ref:  (1, tq, E)            out_dtype (written at last head)
    rest:     (attn_ref, acc_ref) if write_attn else (acc_ref,)
              attn_ref: (1, 1, tq, S_pad); acc_ref: (tq, E) f32 VMEM scratch
    """
    if write_attn:
        attn_ref, acc_ref = rest
    else:
        (acc_ref,) = rest

    h = pl.program_id(2)
    num_h = pl.num_programs(2)

    q = q_ref[0, 0]                      # (tq, Dp)     bf16
    k = k_ref[0, 0]                      # (s_kv, Dp)   bf16
    v = v_ref[0, 0]                      # (s_kv, Dp)   bf16
    tq = q.shape[0]
    s_kv = k.shape[0]

    # Causal + key-padding mask (shared layout with the attention scores).
    q_start = pl.program_id(1) * tq
    row = q_start + lax.broadcasted_iota(jnp.int32, (tq, s_kv), 0)
    col = lax.broadcasted_iota(jnp.int32, (tq, s_kv), 1)
    key_valid = mask_ref[0] != 0.0                       # (1, s_kv) bool
    allowed = jnp.logical_and(col <= row, key_valid)     # (tq, s_kv) bool

    # scores = q @ k^T (MXU, f32 accumulation); scale already folded into q.
    s = lax.dot_general(q, k, (((1,), (1,)), ((), ())),
                        preferred_element_type=jnp.float32)      # (tq, s_kv)
    s = jnp.where(allowed, s, -jnp.inf)

    # Numerically-stable softmax in f32; fully-masked rows give NaN like torch.
    m = jnp.max(s, axis=-1, keepdims=True)
    p = jnp.exp(s - m)
    denom = jnp.sum(p, axis=-1, keepdims=True)
    inv = pl.reciprocal(denom, approx=False)             # exact: rows sum to 1
    a = p * inv                                          # (tq, s_kv) f32

    if write_attn:
        attn_ref[0, 0] = a.astype(attn_ref.dtype)

    # context for this head and its slice of the output projection.
    ctx = jnp.dot(a.astype(jnp.bfloat16), v,
                  preferred_element_type=jnp.float32)            # (tq, Dp)
    contrib = jnp.dot(ctx.astype(jnp.bfloat16), wout_ref[0],
                      preferred_element_type=jnp.float32)        # (tq, E)

    @pl.when(h == 0)
    def _():
        acc_ref[...] = contrib + bout_ref[...]

    @pl.when(h != 0)
    def _():
        acc_ref[...] += contrib

    @pl.when(h == num_h - 1)
    def _():
        out_ref[0] = acc_ref[...].astype(out_ref.dtype)


def multi_head_attention(x, attention_mask, w_qkv, b_qkv, w_out, b_out,
                         num_heads, *, q_tile=256, attn_dtype=jnp.bfloat16,
                         out_dtype=jnp.float32, return_attention=True):
    """Pallas MHA forward matching the PyTorch module.

    x:              (B, S, E) float32
    attention_mask: (B, S)    1.0 keep / 0.0 pad
    w_qkv:          (E, 3E)   pre-transposed Linear weight (y = x @ w + b)
    b_qkv:          (3E,)
    w_out:          (E, E)    pre-transposed
    b_out:          (E,)
    Returns (outputs (B,S,E) out_dtype,
             attention (B,H,S,S) attn_dtype or None if return_attention=False).
    """
    B, S, E = x.shape
    H = num_heads
    assert E % H == 0
    Dh = E // H
    Dp = ((Dh + 7) // 8) * 8            # head dim padded to a sublane multiple
    Ep = H * Dp
    scale = 1.0 / math.sqrt(Dh)

    # Pad seq to a multiple of the query tile (multiple of 128) so attention
    # stores are lane-dense and all blocks satisfy the (8,128) rule.
    q_tile = max(128, ((q_tile + 127) // 128) * 128)
    s_pad = ((S + q_tile - 1) // q_tile) * q_tile
    nq = s_pad // q_tile
    pad_s = s_pad - S
    if pad_s:
        x = jnp.pad(x, ((0, 0), (0, pad_s), (0, 0)))
        attention_mask = jnp.pad(attention_mask, ((0, 0), (0, pad_s)))

    x_bf = x.astype(jnp.bfloat16)
    mask3 = attention_mask.reshape(B, 1, s_pad).astype(jnp.float32)

    # Fused QKV weight permuted to [tensor][head][dim] column order, head dim
    # zero-padded to Dp, q columns pre-scaled by 1/sqrt(Dh).  Column
    # h*3Dh + t*Dh + d of w_qkv is (head h, tensor t, dim d), exactly torch's
    # reshape(B,S,H,3Dh).transpose(1,2).chunk(3,-1).
    w3 = w_qkv.reshape(E, H, 3, Dh).transpose(0, 2, 1, 3)      # (E, 3, H, Dh)
    b3 = b_qkv.reshape(H, 3, Dh).transpose(1, 0, 2)            # (3, H, Dh)
    if Dp != Dh:
        w3 = jnp.pad(w3, ((0, 0), (0, 0), (0, 0), (0, Dp - Dh)))
        b3 = jnp.pad(b3, ((0, 0), (0, 0), (0, Dp - Dh)))
    tscale = jnp.asarray([scale, 1.0, 1.0], jnp.float32).reshape(1, 3, 1, 1)
    w_big = (w3 * tscale).reshape(E, 3 * Ep).astype(jnp.bfloat16)
    b_big = (b3 * tscale[0]).reshape(1, 3 * Ep).astype(jnp.float32)

    # Per-head output-projection weight: rows h*Dh..(h+1)*Dh of W_out, padded.
    w_o = w_out.reshape(H, Dh, E)
    if Dp != Dh:
        w_o = jnp.pad(w_o, ((0, 0), (0, Dp - Dh), (0, 0)))
    w_o = w_o.astype(jnp.bfloat16)
    b_o = b_out.reshape(1, E).astype(jnp.float32)

    # 48 MiB scoped VMEM: headroom below v7x's 64 MiB physical, generous on
    # v5e/v6e (128 MiB).
    vmem_limit = 48 * 1024 * 1024

    # ---- kernel 1: fused QKV projection (bf16 MXU, f32 accumulate) -----------
    qkv_kernel = functools.partial(_qkv_proj_kernel, num_heads=H, head_dim_p=Dp)
    rep2 = lambda b, s: (0, 0)
    qkv_out_spec = pl.BlockSpec((1, H, q_tile, Dp), lambda b, s: (b, 0, s, 0))
    q_b, k_b, v_b = pl.pallas_call(
        qkv_kernel,
        out_shape=tuple(jax.ShapeDtypeStruct((B, H, s_pad, Dp), jnp.bfloat16)
                        for _ in range(3)),
        grid_spec=pltpu.PrefetchScalarGridSpec(
            num_scalar_prefetch=0,
            grid=(B, nq),
            in_specs=[
                pl.BlockSpec((1, q_tile, E), lambda b, s: (b, s, 0)),   # x tile
                pl.BlockSpec((E, 3 * Ep), rep2),                        # fused W
                pl.BlockSpec((1, 3 * Ep), rep2),                        # fused b
            ],
            out_specs=(qkv_out_spec, qkv_out_spec, qkv_out_spec),
        ),
        compiler_params=pltpu.CompilerParams(
            dimension_semantics=("parallel", "parallel"),
            vmem_limit_bytes=vmem_limit),
    )(x_bf, w_big, b_big)

    # ---- kernel 2: masked softmax attention + per-head output projection -----
    attn_kernel = functools.partial(_attention_kernel,
                                    write_attn=return_attention)
    out_shapes = [jax.ShapeDtypeStruct((B, s_pad, E), out_dtype)]
    out_specs = [pl.BlockSpec((1, q_tile, E), lambda b, qi, h: (b, qi, 0))]
    if return_attention:
        out_shapes.append(jax.ShapeDtypeStruct((B, H, s_pad, s_pad), attn_dtype))
        out_specs.append(pl.BlockSpec((1, 1, q_tile, s_pad),
                                      lambda b, qi, h: (b, h, qi, 0)))

    results = pl.pallas_call(
        attn_kernel,
        out_shape=tuple(out_shapes),
        grid_spec=pltpu.PrefetchScalarGridSpec(
            num_scalar_prefetch=0,
            grid=(B, nq, H),
            in_specs=[
                pl.BlockSpec((1, 1, q_tile, Dp), lambda b, qi, h: (b, h, qi, 0)),
                pl.BlockSpec((1, 1, s_pad, Dp), lambda b, qi, h: (b, h, 0, 0)),
                pl.BlockSpec((1, 1, s_pad, Dp), lambda b, qi, h: (b, h, 0, 0)),
                pl.BlockSpec((1, 1, s_pad), lambda b, qi, h: (b, 0, 0)),
                pl.BlockSpec((1, Dp, E), lambda b, qi, h: (h, 0, 0)),
                pl.BlockSpec((1, E), lambda b, qi, h: (0, 0)),
            ],
            out_specs=tuple(out_specs),
            scratch_shapes=[pltpu.VMEM((q_tile, E), jnp.float32)],
        ),
        compiler_params=pltpu.CompilerParams(
            dimension_semantics=("parallel", "parallel", "arbitrary"),
            vmem_limit_bytes=vmem_limit),
    )(q_b, k_b, v_b, mask3, w_o, b_o)

    out_p = results[0][:, :S, :]
    attn_p = results[1][:, :, :S, :S] if return_attention else None
    return out_p, attn_p


def _reference(x, attention_mask, w_qkv, b_qkv, w_out, b_out, num_heads):
    """Pure-JAX f32 reference mirroring the PyTorch module."""
    B, S, E = x.shape
    H = num_heads
    Dh = E // H
    qkv = x @ w_qkv + b_qkv                                   # (B,S,3E)
    qkv = qkv.reshape(B, S, H, 3 * Dh).transpose(0, 2, 1, 3)  # (B,H,S,3Dh)
    q, k, v = qkv[..., :Dh], qkv[..., Dh:2 * Dh], qkv[..., 2 * Dh:]
    scale = 1.0 / math.sqrt(Dh)
    scores = jnp.einsum('bhsd,bhtd->bhst', q, k) * scale
    causal = jnp.tril(jnp.ones((S, S), dtype=bool))[None, None]
    pad = attention_mask[:, None, None, :].astype(bool)
    combined = causal & pad
    scores = jnp.where(combined, scores, -jnp.inf)
    attn = jax.nn.softmax(scores, axis=-1)
    ctx = jnp.einsum('bhst,bhtd->bhsd', attn, v)
    ctx = ctx.transpose(0, 2, 1, 3).reshape(B, S, E)
    out = ctx @ w_out + b_out
    return out, attn


if __name__ == "__main__":
    B, S, E, H = 2, 8, 32, 4

    key = jax.random.PRNGKey(0)
    kx, kw1, kb1, kw2, kb2 = jax.random.split(key, 5)

    x = jax.random.normal(kx, (B, S, E), dtype=jnp.float32)
    # padding mask: batch 0 fully valid, batch 1 last two positions padded
    attention_mask = jnp.ones((B, S), dtype=jnp.float32)
    attention_mask = attention_mask.at[1, -2:].set(0.0)

    # Deterministic "nn.Linear"-like params (stored as [in, out]).
    bound1 = 1.0 / math.sqrt(E)
    w_qkv = jax.random.uniform(kw1, (E, 3 * E), minval=-bound1, maxval=bound1,
                               dtype=jnp.float32)
    b_qkv = jax.random.uniform(kb1, (3 * E,), minval=-bound1, maxval=bound1,
                               dtype=jnp.float32)
    w_out = jax.random.uniform(kw2, (E, E), minval=-bound1, maxval=bound1,
                               dtype=jnp.float32)
    b_out = jax.random.uniform(kb2, (E,), minval=-bound1, maxval=bound1,
                               dtype=jnp.float32)

    out, attn = multi_head_attention(x, attention_mask, w_qkv, b_qkv,
                                     w_out, b_out, num_heads=H)
    out = jax.block_until_ready(out)
    attn = jax.block_until_ready(attn)

    ref_out, ref_attn = _reference(x, attention_mask, w_qkv, b_qkv,
                                   w_out, b_out, num_heads=H)
    assert out.shape == (B, S, E) and attn.shape == (B, H, S, S)
    # bf16 MXU operands / bf16 attention output -> bf16-level tolerance vs f32 ref
    assert jnp.all(jnp.isfinite(out)) and jnp.all(jnp.isfinite(
        attn.astype(jnp.float32)))
    assert jnp.allclose(out, ref_out, atol=5e-2, rtol=5e-2), \
        float(jnp.max(jnp.abs(out - ref_out)))
    assert jnp.allclose(attn.astype(jnp.float32), ref_attn,
                        atol=5e-2, rtol=5e-2), \
        float(jnp.max(jnp.abs(attn.astype(jnp.float32) - ref_attn)))

    # Flag path that skips materializing the (B,H,S,S) attention weights.
    out2, attn_none = multi_head_attention(x, attention_mask, w_qkv, b_qkv,
                                           w_out, b_out, num_heads=H,
                                           return_attention=False)
    out2 = jax.block_until_ready(out2)
    assert attn_none is None
    assert jnp.allclose(out2, ref_out, atol=5e-2, rtol=5e-2), \
        float(jnp.max(jnp.abs(out2 - ref_out)))

    print("KERNEL_OK")
</pallas_src>

<mosaic_0001>
module attributes {stable_mosaic.version = 11 : i64} {
  func.func @_qkv_proj_kernel(%arg0: i32, %arg1: i32, %arg2: memref<1x256x32xbf16, #tpu.memory_space<vmem>>, %arg3: memref<32x96xbf16, #tpu.memory_space<vmem>>, %arg4: memref<1x96xf32, #tpu.memory_space<vmem>>, %arg5: memref<1x4x256x8xbf16, #tpu.memory_space<vmem>>, %arg6: memref<1x4x256x8xbf16, #tpu.memory_space<vmem>>, %arg7: memref<1x4x256x8xbf16, #tpu.memory_space<vmem>>) attributes {dimension_semantics = [#tpu.dimension_semantics<parallel>, #tpu.dimension_semantics<parallel>], iteration_bounds = array<i64: 2, 1>, scalar_prefetch = 0 : i64, scratch_operands = 0 : i64, tpu.core_type = #tpu.core_type<tc>, window_params = [{transform_indices = @transform_0, window_bounds = array<i64: 1, 256, 32>}, {pipeline_mode = #tpu.pipeline_mode<synchronous>, transform_indices = @transform_1, window_bounds = array<i64: 32, 96>}, {pipeline_mode = #tpu.pipeline_mode<synchronous>, transform_indices = @transform_2, window_bounds = array<i64: 1, 96>}, {transform_indices = @transform_3, window_bounds = array<i64: 1, 4, 256, 8>}, {transform_indices = @transform_4, window_bounds = array<i64: 1, 4, 256, 8>}, {transform_indices = @transform_5, window_bounds = array<i64: 1, 4, 256, 8>}]} {
    %c0 = arith.constant 0 : index
    %c0_0 = arith.constant 0 : index
    %c0_1 = arith.constant 0 : index
    %0 = vector.load %arg2[%c0, %c0_0, %c0_1] : memref<1x256x32xbf16, #tpu.memory_space<vmem>>, vector<1x256x32xbf16>
    %1 = vector.shape_cast %0 : vector<1x256x32xbf16> to vector<256x32xbf16>
    %c0_2 = arith.constant 0 : index
    %c0_3 = arith.constant 0 : index
    %2 = vector.load %arg3[%c0_2, %c0_3] : memref<32x96xbf16, #tpu.memory_space<vmem>>, vector<32x96xbf16>
    %cst = arith.constant dense<0.000000e+00> : vector<256x96xf32>
    %3 = tpu.matmul %1, %2, %cst {dimension_numbers = #tpu.dot_dimension_numbers<[1], [0], [0], [1], [0, 0, 1, 1], [], []>} : vector<256x32xbf16>, vector<32x96xbf16>, vector<256x96xf32> -> vector<256x96xf32>
    %c0_4 = arith.constant 0 : index
    %c0_5 = arith.constant 0 : index
    %4 = vector.load %arg4[%c0_4, %c0_5] : memref<1x96xf32, #tpu.memory_space<vmem>>, vector<1x96xf32>
    %5 = vector.broadcast %4 : vector<1x96xf32> to vector<256x96xf32>
    %6 = arith.addf %3, %5 : vector<256x96xf32>
    %7 = arith.truncf %6 : vector<256x96xf32> to vector<256x96xbf16>
    %8 = vector.extract_strided_slice %7 {offsets = [0, 0], sizes = [256, 8], strides = [1, 1]} : vector<256x96xbf16> to vector<256x8xbf16>
    %c0_6 = arith.constant 0 : index
    %c0_7 = arith.constant 0 : index
    %c0_8 = arith.constant 0 : index
    %c0_9 = arith.constant 0 : index
    %9 = vector.load %arg5[%c0_6, %c0_7, %c0_8, %c0_9] : memref<1x4x256x8xbf16, #tpu.memory_space<vmem>>, vector<1x1x256x8xbf16>
    %10 = vector.shape_cast %9 : vector<1x1x256x8xbf16> to vector<256x8xbf16>
    %11 = vector.shape_cast %8 : vector<256x8xbf16> to vector<1x1x256x8xbf16>
    tpu.vector_store %arg5[%c0_6, %c0_7, %c0_8, %c0_9], %11 {strides = array<i32>} : memref<1x4x256x8xbf16, #tpu.memory_space<vmem>>, vector<1x1x256x8xbf16>,
    %12 = vector.extract_strided_slice %7 {offsets = [0, 32], sizes = [256, 8], strides = [1, 1]} : vector<256x96xbf16> to vector<256x8xbf16>
    %c0_10 = arith.constant 0 : index
    %c0_11 = arith.constant 0 : index
    %c0_12 = arith.constant 0 : index
    %c0_13 = arith.constant 0 : index
    %13 = vector.load %arg6[%c0_10, %c0_11, %c0_12, %c0_13] : memref<1x4x256x8xbf16, #tpu.memory_space<vmem>>, vector<1x1x256x8xbf16>
    %14 = vector.shape_cast %13 : vector<1x1x256x8xbf16> to vector<256x8xbf16>
    %15 = vector.shape_cast %12 : vector<256x8xbf16> to vector<1x1x256x8xbf16>
    tpu.vector_store %arg6[%c0_10, %c0_11, %c0_12, %c0_13], %15 {strides = array<i32>} : memref<1x4x256x8xbf16, #tpu.memory_space<vmem>>, vector<1x1x256x8xbf16>,
    %16 = vector.extract_strided_slice %7 {offsets = [0, 64], sizes = [256, 8], strides = [1, 1]} : vector<256x96xbf16> to vector<256x8xbf16>
    %c0_14 = arith.constant 0 : index
    %c0_15 = arith.constant 0 : index
    %c0_16 = arith.constant 0 : index
    %c0_17 = arith.constant 0 : index
    %17 = vector.load %arg7[%c0_14, %c0_15, %c0_16, %c0_17] : memref<1x4x256x8xbf16, #tpu.memory_space<vmem>>, vector<1x1x256x8xbf16>
    %18 = vector.shape_cast %17 : vector<1x1x256x8xbf16> to vector<256x8xbf16>
    %19 = vector.shape_cast %16 : vector<256x8xbf16> to vector<1x1x256x8xbf16>
    tpu.vector_store %arg7[%c0_14, %c0_15, %c0_16, %c0_17], %19 {strides = array<i32>} : memref<1x4x256x8xbf16, #tpu.memory_space<vmem>>, vector<1x1x256x8xbf16>,
    %20 = vector.extract_strided_slice %7 {offsets = [0, 8], sizes = [256, 8], strides = [1, 1]} : vector<256x96xbf16> to vector<256x8xbf16>
    %c0_18 = arith.constant 0 : index
    %c1 = arith.constant 1 : index
    %c0_19 = arith.constant 0 : index
    %c0_20 = arith.constant 0 : index
    %21 = vector.load %arg5[%c0_18, %c1, %c0_19, %c0_20] : memref<1x4x256x8xbf16, #tpu.memory_space<vmem>>, vector<1x1x256x8xbf16>
    %22 = vector.shape_cast %21 : vector<1x1x256x8xbf16> to vector<256x8xbf16>
    %23 = vector.shape_cast %20 : vector<256x8xbf16> to vector<1x1x256x8xbf16>
    tpu.vector_store %arg5[%c0_18, %c1, %c0_19, %c0_20], %23 {strides = array<i32>} : memref<1x4x256x8xbf16, #tpu.memory_space<vmem>>, vector<1x1x256x8xbf16>,
    %24 = vector.extract_strided_slice %7 {offsets = [0, 40], sizes = [256, 8], strides = [1, 1]} : vector<256x96xbf16> to vector<256x8xbf16>
    %c0_21 = arith.constant 0 : index
    %c1_22 = arith.constant 1 : index
    %c0_23 = arith.constant 0 : index
    %c0_24 = arith.constant 0 : index
    %25 = vector.load %arg6[%c0_21, %c1_22, %c0_23, %c0_24] : memref<1x4x256x8xbf16, #tpu.memory_space<vmem>>, vector<1x1x256x8xbf16>
    %26 = vector.shape_cast %25 : vector<1x1x256x8xbf16> to vector<256x8xbf16>
    %27 = vector.shape_cast %24 : vector<256x8xbf16> to vector<1x1x256x8xbf16>
    tpu.vector_store %arg6[%c0_21, %c1_22, %c0_23, %c0_24], %27 {strides = array<i32>} : memref<1x4x256x8xbf16, #tpu.memory_space<vmem>>, vector<1x1x256x8xbf16>,
    %28 = vector.extract_strided_slice %7 {offsets = [0, 72], sizes = [256, 8], strides = [1, 1]} : vector<256x96xbf16> to vector<256x8xbf16>
    %c0_25 = arith.constant 0 : index
    %c1_26 = arith.constant 1 : index
    %c0_27 = arith.constant 0 : index
    %c0_28 = arith.constant 0 : index
    %29 = vector.load %arg7[%c0_25, %c1_26, %c0_27, %c0_28] : memref<1x4x256x8xbf16, #tpu.memory_space<vmem>>, vector<1x1x256x8xbf16>
    %30 = vector.shape_cast %29 : vector<1x1x256x8xbf16> to vector<256x8xbf16>
    %31 = vector.shape_cast %28 : vector<256x8xbf16> to vector<1x1x256x8xbf16>
    tpu.vector_store %arg7[%c0_25, %c1_26, %c0_27, %c0_28], %31 {strides = array<i32>} : memref<1x4x256x8xbf16, #tpu.memory_space<vmem>>, vector<1x1x256x8xbf16>,
    %32 = vector.extract_strided_slice %7 {offsets = [0, 16], sizes = [256, 8], strides = [1, 1]} : vector<256x96xbf16> to vector<256x8xbf16>
    %c0_29 = arith.constant 0 : index
    %c2 = arith.constant 2 : index
    %c0_30 = arith.constant 0 : index
    %c0_31 = arith.constant 0 : index
    %33 = vector.load %arg5[%c0_29, %c2, %c0_30, %c0_31] : memref<1x4x256x8xbf16, #tpu.memory_space<vmem>>, vector<1x1x256x8xbf16>
    %34 = vector.shape_cast %33 : vector<1x1x256x8xbf16> to vector<256x8xbf16>
    %35 = vector.shape_cast %32 : vector<256x8xbf16> to vector<1x1x256x8xbf16>
    tpu.vector_store %arg5[%c0_29, %c2, %c0_30, %c0_31], %35 {strides = array<i32>} : memref<1x4x256x8xbf16, #tpu.memory_space<vmem>>, vector<1x1x256x8xbf16>,
    %36 = vector.extract_strided_slice %7 {offsets = [0, 48], sizes = [256, 8], strides = [1, 1]} : vector<256x96xbf16> to vector<256x8xbf16>
    %c0_32 = arith.constant 0 : index
    %c2_33 = arith.constant 2 : index
    %c0_34 = arith.constant 0 : index
    %c0_35 = arith.constant 0 : index
    %37 = vector.load %arg6[%c0_32, %c2_33, %c0_34, %c0_35] : memref<1x4x256x8xbf16, #tpu.memory_space<vmem>>, vector<1x1x256x8xbf16>
    %38 = vector.shape_cast %37 : vector<1x1x256x8xbf16> to vector<256x8xbf16>
    %39 = vector.shape_cast %36 : vector<256x8xbf16> to vector<1x1x256x8xbf16>
    tpu.vector_store %arg6[%c0_32, %c2_33, %c0_34, %c0_35], %39 {strides = array<i32>} : memref<1x4x256x8xbf16, #tpu.memory_space<vmem>>, vector<1x1x256x8xbf16>,
    %40 = vector.extract_strided_slice %7 {offsets = [0, 80], sizes = [256, 8], strides = [1, 1]} : vector<256x96xbf16> to vector<256x8xbf16>
    %c0_36 = arith.constant 0 : index
    %c2_37 = arith.constant 2 : index
    %c0_38 = arith.constant 0 : index
    %c0_39 = arith.constant 0 : index
    %41 = vector.load %arg7[%c0_36, %c2_37, %c0_38, %c0_39] : memref<1x4x256x8xbf16, #tpu.memory_space<vmem>>, vector<1x1x256x8xbf16>
    %42 = vector.shape_cast %41 : vector<1x1x256x8xbf16> to vector<256x8xbf16>
    %43 = vector.shape_cast %40 : vector<256x8xbf16> to vector<1x1x256x8xbf16>
    tpu.vector_store %arg7[%c0_36, %c2_37, %c0_38, %c0_39], %43 {strides = array<i32>} : memref<1x4x256x8xbf16, #tpu.memory_space<vmem>>, vector<1x1x256x8xbf16>,
    %44 = vector.extract_strided_slice %7 {offsets = [0, 24], sizes = [256, 8], strides = [1, 1]} : vector<256x96xbf16> to vector<256x8xbf16>
    %c0_40 = arith.constant 0 : index
    %c3 = arith.constant 3 : index
    %c0_41 = arith.constant 0 : index
    %c0_42 = arith.constant 0 : index
    %45 = vector.load %arg5[%c0_40, %c3, %c0_41, %c0_42] : memref<1x4x256x8xbf16, #tpu.memory_space<vmem>>, vector<1x1x256x8xbf16>
    %46 = vector.shape_cast %45 : vector<1x1x256x8xbf16> to vector<256x8xbf16>
    %47 = vector.shape_cast %44 : vector<256x8xbf16> to vector<1x1x256x8xbf16>
    tpu.vector_store %arg5[%c0_40, %c3, %c0_41, %c0_42], %47 {strides = array<i32>} : memref<1x4x256x8xbf16, #tpu.memory_space<vmem>>, vector<1x1x256x8xbf16>,
    %48 = vector.extract_strided_slice %7 {offsets = [0, 56], sizes = [256, 8], strides = [1, 1]} : vector<256x96xbf16> to vector<256x8xbf16>
    %c0_43 = arith.constant 0 : index
    %c3_44 = arith.constant 3 : index
    %c0_45 = arith.constant 0 : index
    %c0_46 = arith.constant 0 : index
    %49 = vector.load %arg6[%c0_43, %c3_44, %c0_45, %c0_46] : memref<1x4x256x8xbf16, #tpu.memory_space<vmem>>, vector<1x1x256x8xbf16>
    %50 = vector.shape_cast %49 : vector<1x1x256x8xbf16> to vector<256x8xbf16>
    %51 = vector.shape_cast %48 : vector<256x8xbf16> to vector<1x1x256x8xbf16>
    tpu.vector_store %arg6[%c0_43, %c3_44, %c0_45, %c0_46], %51 {strides = array<i32>} : memref<1x4x256x8xbf16, #tpu.memory_space<vmem>>, vector<1x1x256x8xbf16>,
    %52 = vector.extract_strided_slice %7 {offsets = [0, 88], sizes = [256, 8], strides = [1, 1]} : vector<256x96xbf16> to vector<256x8xbf16>
    %c0_47 = arith.constant 0 : index
    %c3_48 = arith.constant 3 : index
    %c0_49 = arith.constant 0 : index
    %c0_50 = arith.constant 0 : index
    %53 = vector.load %arg7[%c0_47, %c3_48, %c0_49, %c0_50] : memref<1x4x256x8xbf16, #tpu.memory_space<vmem>>, vector<1x1x256x8xbf16>
    %54 = vector.shape_cast %53 : vector<1x1x256x8xbf16> to vector<256x8xbf16>
    %55 = vector.shape_cast %52 : vector<256x8xbf16> to vector<1x1x256x8xbf16>
    tpu.vector_store %arg7[%c0_47, %c3_48, %c0_49, %c0_50], %55 {strides = array<i32>} : memref<1x4x256x8xbf16, #tpu.memory_space<vmem>>, vector<1x1x256x8xbf16>,
    return
  }
  func.func @transform_0(%arg0: i32, %arg1: i32) -> (i32, i32, i32) {
    %c0_i32 = arith.constant 0 : i32
    %c0_i32_0 = arith.constant 0 : i32
    return %arg0, %arg1, %c0_i32 : i32, i32, i32
  }
  func.func @transform_1(%arg0: i32, %arg1: i32) -> (i32, i32) {
    %c0_i32 = arith.constant 0 : i32
    %c0_i32_0 = arith.constant 0 : i32
    %c0_i32_1 = arith.constant 0 : i32
    return %c0_i32, %c0_i32_0 : i32, i32
  }
  func.func @transform_2(%arg0: i32, %arg1: i32) -> (i32, i32) {
    %c0_i32 = arith.constant 0 : i32
    %c0_i32_0 = arith.constant 0 : i32
    %c0_i32_1 = arith.constant 0 : i32
    return %c0_i32, %c0_i32_0 : i32, i32
  }
  func.func @transform_3(%arg0: i32, %arg1: i32) -> (i32, i32, i32, i32) {
    %c0_i32 = arith.constant 0 : i32
    %c0_i32_0 = arith.constant 0 : i32
    %c0_i32_1 = arith.constant 0 : i32
    return %arg0, %c0_i32, %arg1, %c0_i32_0 : i32, i32, i32, i32
  }
  func.func @transform_4(%arg0: i32, %arg1: i32) -> (i32, i32, i32, i32) {
    %c0_i32 = arith.constant 0 : i32
    %c0_i32_0 = arith.constant 0 : i32
    %c0_i32_1 = arith.constant 0 : i32
    return %arg0, %c0_i32, %arg1, %c0_i32_0 : i32, i32, i32, i32
  }
  func.func @transform_5(%arg0: i32, %arg1: i32) -> (i32, i32, i32, i32) {
    %c0_i32 = arith.constant 0 : i32
    %c0_i32_0 = arith.constant 0 : i32
    %c0_i32_1 = arith.constant 0 : i32
    return %arg0, %c0_i32, %arg1, %c0_i32_0 : i32, i32, i32, i32
  }
}

</mosaic_0001>

<bundles_post_ra>
// kernel: tpu_custom_call.1
= control target key start
LH: loop header
LB: loop body
LE: loop exit
PB: predicated region body
PF: predicated region fallthrough
CT: control target
= control target key end

     0   :  { %s3004_s18 = smov 0   ;;  %s3006_s19 = smov 0   ;;  %s4703_s0 = inlined_call_operand.vmem [shape: bf16[2,256,32], index: 0, kind: input, shape index: {}]   ;;  %s4704_s1 = inlined_call_operand.vmem [shape: bf16[32,96], index: 1, kind: input, shape index: {}]   ;;  %s4705_s2 = inlined_call_operand.vmem [shape: f32[1,96], index: 2, kind: input, shape index: {}]   ;;  %s4706_s3 = inlined_call_operand.vmem [shape: bf16[2,4,256,8], index: 3, kind: output, shape index: {0}]   ;;  %s4707_s4 = inlined_call_operand.vmem [shape: bf16[2,4,256,8], index: 4, kind: output, shape index: {1}]   ;;  %s4708_s5 = inlined_call_operand.vmem [shape: bf16[2,4,256,8], index: 5, kind: output, shape index: {2}]  }
   0x1   :  { %s3008_s20 = smov 0  }
   0x2 LB: > { %s28_s21 = sadd.s32 1, %s2957_s19  ;;  %p2426_p0 = scmp.ge.s32.totalorder %s2961_s20, 1  ;;  %s2961_s20 = sphi %s3008_s20, %s16_s20   ;;  %s2957_s19 = sphi %s3006_s19, %s4710_s19   ;;  %s2953_s18 = sphi %s3004_s18, %s4709_s18  }
   0x3   : > { %p30_p1 = scmp.ge.s32.totalorder %s28_s21, 2  ;;  %p217_p2 = scmp.lt.s32.totalorder %s2961_s20, 3 }
   0x5   : > { %s4712_s21 = smov (%p30_p1, %s28_s21), 0  ;;  %p218_p3 = pnand %p2426_p0, %p217_p2 }
   0x6   : > { %p272_p4 = scmp.lt.s32.totalorder (!%p218_p3), %s2953_s18, 1  ;;  %s2963_s11 = smov (!%p218_p3), 96  }
   0x7   : > { %221 = sbr.rel (%p218_p3) target bundleno = 1035 (0x40b), region = 32  ;;  %s2964_s12 = smov (!%p218_p3), 64  }
   0x8   : > { %s2965_s13 = smov (!%p218_p3), 120   ;;  %s2966_s14 = smov (!%p218_p3), 88  }
   0x9   : > { %s2967_s24 = smov (!%p218_p3), 56   ;;  %s2968_s25 = smov (!%p218_p3), 112  }
   0xa   : > { %s2970_s27 = smov (!%p218_p3), 48   ;;  %s2971_s28 = smov (!%p218_p3), 104  }
   0xb   : > { %s2973_s30 = smov (!%p218_p3), 40  }
   0xc   : > { %v2921_v0 = vld [vmem:[%s4704_s1 + $0x8] sm:$0xff]   ;;  %v2922_v1 = vld [vmem:[%s4704_s1] sm:$0xff]   ;;  %s4714_s18 = smov (!%p272_p4, %s2953_s18), 1  ;;  %vm447_vm0 = vcmask 261120   ;;  %vm785_vm1 = vcmask 60416  }
   0xd   : > { %2846 = vmatprep.subr.bf16.mxu0 %v2921_v0  ;;  %2882 = vmatprep.subr.bf16.mxu1 %v2921_v0  ;;  %s2792_s26 = sshll.u32 %s4714_s18, 7  ;;  %v3071_v18 = vld [vmem:[%s4705_s2] ss:$0 sm:$0xff]  ;;  %s3074_s7 = sshll.u32 %s4714_s18, 9 }
   0xe   : > { %2847 = vmatpush3.bf16.msra.mxu0 %v2921_v0  ;;  %2884 = vmatpush3.bf16.msra.mxu1 %v2921_v0  ;;  %s3034_s29 = scalar_lea.vmem %s4703_s0, %s2792_s26  ;;  %s3081_s10 = scalar_lea.vmem %s4706_s3, %s3074_s7 }
   0xf   : > { %2848 = vmatprep.subr.bf16.mxu0 %v2922_v1  ;;  %2883 = vmatprep.subr.bf16.mxu1 %v2922_v1  ;;  %v2923_v2 = vld [vmem:[%s3034_s29] sm:$0xff]   ;;  %v2925_v4 = vld [vmem:[%s3034_s29 + $0x8] sm:$0xff]   ;;  %v2927_v6 = vld [vmem:[%s3034_s29 + $0x10] sm:$0xff]   ;;  %s3392_s17 = scalar_lea.vmem %s4707_s4, %s3074_s7  ;;  %s3408_s23 = scalar_lea.vmem %s4708_s5, %s3074_s7 }
  0x10   : > { %v2924_v3 = vld [vmem:[%s3034_s29 + $0x40] sm:$0xff]   ;;  %2850 = vmatprep.mubr.msk.bf16.mxu0 %vm447_vm0, %v2923_v2  ;;  %v2926_v5 = vld [vmem:[%s3034_s29 + $0x48] sm:$0xff]   ;;  %v2929_v7 = vld [vmem:[%s3034_s29 + $0x50] sm:$0xff]   ;;  %s2969_s26 = smov 80  }
  0x11   : > { %2866 = vmatprep.mubr.msk.bf16.mxu1 %vm447_vm0, %v2924_v3  ;;  %v2928_v8 = vld [vmem:[%s3034_s29 + $0x18] sm:$0xff]   ;;  %v2931_v10 = vld [vmem:[%s3034_s29 + $0x20] sm:$0xff]   ;;  %v2932_v12 = vld [vmem:[%s3034_s29 + $0x28] sm:$0xff]  }
  0x12   : > { %2849 = vmatpush3.bf16.msra.mxu0 %v2922_v1  ;;  %2885 = vmatpush3.bf16.msra.mxu1 %v2922_v1  ;;  %v2930_v9 = vld [vmem:[%s3034_s29 + $0x58] sm:$0xff]   ;;  %v2933_v11 = vld [vmem:[%s3034_s29 + $0x60] sm:$0xff]   ;;  %v2934_v13 = vld [vmem:[%s3034_s29 + $0x68] sm:$0xff]  }
  0x13   : > { %v2935_v14 = vld [vmem:[%s3034_s29 + $0x30] sm:$0xff]   ;;  %v2936_v16 = vld [vmem:[%s3034_s29 + $0x38] sm:$0xff]  }
  0x14   : > { %v2937_v15 = vld [vmem:[%s3034_s29 + $0x70] sm:$0xff]   ;;  %v2938_v17 = vld [vmem:[%s3034_s29 + $0x78] sm:$0xff]   ;;  %s2972_s29 = smov 72  }
  0x15   : > { %2851 = vmatmul.mubr.msk.bf16.vlgmr.msra.gmra.mxu0 %vm447_vm0, %v2925_v4  ;;  %2867 = vmatmul.mubr.msk.bf16.vlgmr.msra.gmra.mxu1 %vm447_vm0, %v2926_v5 }
  0x16   : > { %2854 = vmatprep.mubr.msk.bf16.mxu0 %vm447_vm0, %v2927_v6  ;;  %2870 = vmatprep.mubr.msk.bf16.mxu1 %vm447_vm0, %v2929_v7 }
  0x1d   : > { %2855 = vmatmul.mubr.msk.bf16.gmra.mxu0 %vm447_vm0, %v2928_v8  ;;  %2871 = vmatmul.mubr.msk.bf16.gmra.mxu1 %vm447_vm0, %v2930_v9 }
  0x1e   : > { %2858 = vmatprep.mubr.msk.bf16.mxu0 %vm447_vm0, %v2931_v10  ;;  %2874 = vmatprep.mubr.msk.bf16.mxu1 %vm447_vm0, %v2933_v11 }
  0x25   : > { %2859 = vmatmul.mubr.msk.bf16.gmra.mxu0 %vm447_vm0, %v2932_v12  ;;  %2875 = vmatmul.mubr.msk.bf16.gmra.mxu1 %vm447_vm0, %v2934_v13 }
  0x26   : > { %2862 = vmatprep.mubr.msk.bf16.mxu0 %vm447_vm0, %v2935_v14  ;;  %2878 = vmatprep.mubr.msk.bf16.mxu1 %vm447_vm0, %v2937_v15 }
  0x2d   : > { %2863 = vmatmul.mubr.msk.bf16.gmra.mxu0 %vm447_vm0, %v2936_v16  ;;  %2879 = vmatmul.mubr.msk.bf16.gmra.mxu1 %vm447_vm0, %v2938_v17 }
  0xd5   : > { %v2852_v19 = vpop.f32.mrf.mxu0  ;;  %v2868_v21 = vpop.f32.mrf.mxu1 }
  0xd6   : > { %v539_v20 = vadd.f32 %v2852_v19, %v3071_v18  ;;  %v603_v22 = vadd.f32 %v2868_v21, %v3071_v18 }
  0xd7   : > { %v530_v23 = vpop.f32.mrf.mxu0  ;;  %v594_v26 = vpop.f32.mrf.mxu1 }
  0xd8   : > { %v3084_v24 = vpack.c.bf16 %v539_v20, %v539_v20  ;;  %v531_v25 = vadd.f32 %v3071_v18, %v530_v23  ;;  %v3087_v27 = vpack.c.bf16 %v603_v22, %v603_v22  ;;  %v595_v28 = vadd.f32 %v3071_v18, %v594_v26 }
  0xd9   : > { %v2853_v29 = vpop.f32.mrf.mxu0  ;;  %v2869_v32 = vpop.f32.mrf.mxu1 }
  0xda   : > { %788 = vst.msk [vmem:[%s3081_s10 + $0x8] sm:$0xf] %vm785_vm1, %v3084_v24  ;;  %v3093_v30 = vpack.c.bf16 %v531_v25, %v531_v25  ;;  %v542_v31 = vadd.f32 %v2853_v29, %v3071_v18  ;;  %822 = vrot.lane.b32.xlu1 %v3084_v24, %s2963_s11  ;;  %804 = vst.msk [vmem:[%s3081_s10 + $0x48] sm:$0xf] %vm785_vm1, %v3087_v27  ;;  %v3101_v33 = vpack.c.bf16 %v595_v28, %v595_v28 }
  0xdb   : > { %v606_v34 = vadd.f32 %v2869_v32, %v3071_v18  ;;  %854 = vrot.lane.b32.xlu0 %v3087_v27, %s2963_s11  ;;  %v533_v35 = vpop.f32.mrf.mxu0  ;;  %v597_v38 = vpop.f32.mrf.mxu1 }
  0xdc   : > { %786 = vst.msk [vmem:[%s3081_s10] sm:$0xf] %vm785_vm1, %v3093_v30  ;;  %v3109_v36 = vpack.c.bf16 %v542_v31, %v542_v31  ;;  %v534_v37 = vadd.f32 %v3071_v18, %v533_v35  ;;  %802 = vst.msk [vmem:[%s3081_s10 + $0x40] sm:$0xf] %vm785_vm1, %v3101_v33  ;;  %v598_v40 = vadd.f32 %v3071_v18, %v597_v38 }
  0xdd   : > { %v3115_v39 = vpack.c.bf16 %v606_v34, %v606_v34  ;;  %v2856_v41 = vpop.f32.mrf.mxu0  ;;  %v2872_v44 = vpop.f32.mrf.mxu1 }
  0xde   : > { %789 = vst.msk [vmem:[%s3081_s10 + $0xc] sm:$0xf] %vm785_vm1, %v3109_v36  ;;  %v3121_v42 = vpack.c.bf16 %v534_v37, %v534_v37  ;;  %824 = vrot.lane.b32.xlu1 %v3109_v36, %s2963_s11  ;;  %v555_v43 = vadd.f32 %v2856_v41, %v3071_v18  ;;  %v3129_v45 = vpack.c.bf16 %v598_v40, %v598_v40 }
  0xdf   : > { %805 = vst.msk [vmem:[%s3081_s10 + $0x4c] sm:$0xf] %vm785_vm1, %v3115_v39  ;;  %950 = vrot.lane.b32.xlu0 %v3084_v24, %s2964_s12  ;;  %v546_v46 = vpop.f32.mrf.mxu0  ;;  %v619_v47 = vadd.f32 %v2872_v44, %v3071_v18  ;;  %v610_v50 = vpop.f32.mrf.mxu1 }
  0xe0   : > { %787 = vst.msk [vmem:[%s3081_s10 + $0x4] sm:$0xf] %vm785_vm1, %v3121_v42  ;;  %v3137_v48 = vpack.c.bf16 %v555_v43, %v555_v43  ;;  %v547_v49 = vadd.f32 %v3071_v18, %v546_v46  ;;  %803 = vst.msk [vmem:[%s3081_s10 + $0x44] sm:$0xf] %vm785_vm1, %v3129_v45  ;;  %v611_v53 = vadd.f32 %v3071_v18, %v610_v50 }
  0xe1   : > { %v2857_v51 = vpop.f32.mrf.mxu0  ;;  %v3143_v52 = vpack.c.bf16 %v619_v47, %v619_v47  ;;  %v2873_v56 = vpop.f32.mrf.mxu1 }
  0xe2   : > { %856 = vrot.lane.b32.xlu1 %v3115_v39, %s2963_s11  ;;  %792 = vst.msk [vmem:[%s3081_s10 + $0x18] sm:$0xf] %vm785_vm1, %v3137_v48  ;;  %v3151_v54 = vpack.c.bf16 %v547_v49, %v547_v49  ;;  %v558_v55 = vadd.f32 %v2857_v51, %v3071_v18  ;;  %v3159_v58 = vpack.c.bf16 %v611_v53, %v611_v53 }
  0xe3   : > { %982 = vrot.lane.b32.xlu0 %v3087_v27, %s2964_s12  ;;  %808 = vst.msk [vmem:[%s3081_s10 + $0x58] sm:$0xf] %vm785_vm1, %v3143_v52  ;;  %v549_v57 = vpop.f32.mrf.mxu0  ;;  %v622_v59 = vadd.f32 %v2873_v56, %v3071_v18  ;;  %v613_v62 = vpop.f32.mrf.mxu1 }
  0xe4   : > { %790 = vst.msk [vmem:[%s3081_s10 + $0x10] sm:$0xf] %vm785_vm1, %v3151_v54  ;;  %v3165_v60 = vpack.c.bf16 %v558_v55, %v558_v55  ;;  %v550_v61 = vadd.f32 %v3071_v18, %v549_v57  ;;  %806 = vst.msk [vmem:[%s3081_s10 + $0x50] sm:$0xf] %vm785_vm1, %v3159_v58  ;;  %v614_v0 = vadd.f32 %v3071_v18, %v613_v62 }
  0xe5   : > { %v3171_v63 = vpack.c.bf16 %v622_v59, %v622_v59  ;;  %v2860_v1 = vpop.f32.mrf.mxu0  ;;  %v2876_v4 = vpop.f32.mrf.mxu1 }
  0xe6   : > { %952 = vrot.lane.b32.xlu1 %v3109_v36, %s2964_s12  ;;  %793 = vst.msk [vmem:[%s3081_s10 + $0x1c] sm:$0xf] %vm785_vm1, %v3165_v60  ;;  %v3179_v2 = vpack.c.bf16 %v550_v61, %v550_v61  ;;  %v571_v3 = vadd.f32 %v2860_v1, %v3071_v18  ;;  %v3187_v5 = vpack.c.bf16 %v614_v0, %v614_v0 }
  0xe7   : > { %1078 = vrot.lane.b32.xlu0 %v3084_v24, %s2965_s13  ;;  %809 = vst.msk [vmem:[%s3081_s10 + $0x5c] sm:$0xf] %vm785_vm1, %v3171_v63  ;;  %v562_v6 = vpop.f32.mrf.mxu0  ;;  %v635_v7 = vadd.f32 %v2876_v4, %v3071_v18  ;;  %v626_v10 = vpop.f32.mrf.mxu1 }
  0xe8   : > { %791 = vst.msk [vmem:[%s3081_s10 + $0x14] sm:$0xf] %vm785_vm1, %v3179_v2  ;;  %v3193_v8 = vpack.c.bf16 %v571_v3, %v571_v3  ;;  %v563_v9 = vadd.f32 %v3071_v18, %v562_v6  ;;  %807 = vst.msk [vmem:[%s3081_s10 + $0x54] sm:$0xf] %vm785_vm1, %v3187_v5  ;;  %v627_v13 = vadd.f32 %v3071_v18, %v626_v10 }
  0xe9   : > { %v2861_v11 = vpop.f32.mrf.mxu0  ;;  %v3199_v12 = vpack.c.bf16 %v635_v7, %v635_v7  ;;  %v2877_v16 = vpop.f32.mrf.mxu1 }
  0xea   : > { %984 = vrot.lane.b32.xlu1 %v3115_v39, %s2964_s12  ;;  %796 = vst.msk [vmem:[%s3081_s10 + $0x28] sm:$0xf] %vm785_vm1, %v3193_v8  ;;  %v3207_v14 = vpack.c.bf16 %v563_v9, %v563_v9  ;;  %v574_v15 = vadd.f32 %v2861_v11, %v3071_v18  ;;  %v3215_v19 = vpack.c.bf16 %v627_v13, %v627_v13 }
  0xeb   : > { %1110 = vrot.lane.b32.xlu0 %v3087_v27, %s2965_s13  ;;  %812 = vst.msk [vmem:[%s3081_s10 + $0x68] sm:$0xf] %vm785_vm1, %v3199_v12  ;;  %v565_v17 = vpop.f32.mrf.mxu0  ;;  %v638_v20 = vadd.f32 %v2877_v16, %v3071_v18  ;;  %v629_v23 = vpop.f32.mrf.mxu1 }
  0xec   : > { %794 = vst.msk [vmem:[%s3081_s10 + $0x20] sm:$0xf] %vm785_vm1, %v3207_v14  ;;  %v3221_v21 = vpack.c.bf16 %v574_v15, %v574_v15  ;;  %v566_v22 = vadd.f32 %v3071_v18, %v565_v17  ;;  %810 = vst.msk [vmem:[%s3081_s10 + $0x60] sm:$0xf] %vm785_vm1, %v3215_v19  ;;  %v630_v26 = vadd.f32 %v3071_v18, %v629_v23 }
  0xed   : > { %v3227_v25 = vpack.c.bf16 %v638_v20, %v638_v20  ;;  %v2864_v31 = vpop.f32.mrf.mxu0  ;;  %v2880_v38 = vpop.f32.mrf.mxu1 }
  0xee   : > { %1080 = vrot.lane.b32.xlu1 %v3109_v36, %s2965_s13  ;;  %797 = vst.msk [vmem:[%s3081_s10 + $0x2c] sm:$0xf] %vm785_vm1, %v3221_v21  ;;  %v3235_v28 = vpack.c.bf16 %v566_v22, %v566_v22  ;;  %v3242_v29 = vpack.c.bf16 %v630_v26, %v630_v26  ;;  %v587_v32 = vadd.f32 %v2864_v31, %v3071_v18 }
  0xef   : > { %1207 = vrot.lane.b32.xlu0 %v3084_v24, %s2966_s14  ;;  %813 = vst.msk [vmem:[%s3081_s10 + $0x6c] sm:$0xf] %vm785_vm1, %v3227_v25  ;;  %v578_v35 = vpop.f32.mrf.mxu0  ;;  %v651_v41 = vadd.f32 %v2880_v38, %v3071_v18  ;;  %v642_v49 = vpop.f32.mrf.mxu1 }
  0xf0   : > { %795 = vst.msk [vmem:[%s3081_s10 + $0x24] sm:$0xf] %vm785_vm1, %v3235_v28  ;;  %811 = vst.msk [vmem:[%s3081_s10 + $0x64] sm:$0xf] %vm785_vm1, %v3242_v29  ;;  %v3273_v34 = vpack.c.bf16 %v587_v32, %v587_v32  ;;  %v579_v37 = vadd.f32 %v3071_v18, %v578_v35  ;;  %v643_v53 = vadd.f32 %v3071_v18, %v642_v49 }
  0xf1   : > { %v2865_v40 = vpop.f32.mrf.mxu0  ;;  %v3287_v46 = vpack.c.bf16 %v651_v41, %v651_v41  ;;  %v2881_v55 = vpop.f32.mrf.mxu1 }
  0xf2   : > { %1112 = vrot.lane.b32.xlu1 %v3115_v39, %s2965_s13  ;;  %800 = vst.msk [vmem:[%s3081_s10 + $0x38] sm:$0xf] %vm785_vm1, %v3273_v34  ;;  %v3282_v43 = vpack.c.bf16 %v579_v37, %v579_v37  ;;  %v590_v44 = vadd.f32 %v2865_v40, %v3071_v18  ;;  %v3306_v57 = vpack.c.bf16 %v643_v53, %v643_v53 }
  0xf3   : > { %1239 = vrot.lane.b32.xlu0 %v3087_v27, %s2966_s14  ;;  %v581_v47 = vpop.f32.mrf.mxu0  ;;  %816 = vst.msk [vmem:[%s3081_s10 + $0x78] sm:$0xf] %vm785_vm1, %v3287_v46  ;;  %v654_v59 = vadd.f32 %v2881_v55, %v3071_v18  ;;  %v645_v61 = vpop.f32.mrf.mxu1 }
  0xf4   : > { %798 = vst.msk [vmem:[%s3081_s10 + $0x30] sm:$0xf] %vm785_vm1, %v3282_v43  ;;  %v3294_v50 = vpack.c.bf16 %v590_v44, %v590_v44  ;;  %v582_v51 = vadd.f32 %v3071_v18, %v581_v47  ;;  %814 = vst.msk [vmem:[%s3081_s10 + $0x70] sm:$0xf] %vm785_vm1, %v3306_v57  ;;  %v646_v0 = vadd.f32 %v3071_v18, %v645_v61 }
  0xf5   : > { %v3319_v62 = vpack.c.bf16 %v654_v59, %v654_v59 }
  0xf6   : > { %1209 = vrot.lane.b32.xlu1 %v3109_v36, %s2966_s14  ;;  %801 = vst.msk [vmem:[%s3081_s10 + $0x3c] sm:$0xf] %vm785_vm1, %v3294_v50  ;;  %v3304_v56 = vpack.c.bf16 %v582_v51, %v582_v51  ;;  %v3325_v1 = vpack.c.bf16 %v646_v0, %v646_v0 }
  0xf7   : > { %818 = vrot.lane.b32.xlu0 %v3093_v30, %s2963_s11  ;;  %817 = vst.msk [vmem:[%s3081_s10 + $0x7c] sm:$0xf] %vm785_vm1, %v3319_v62 }
  0xf8   : > { %799 = vst.msk [vmem:[%s3081_s10 + $0x34] sm:$0xf] %vm785_vm1, %v3304_v56  ;;  %815 = vst.msk [vmem:[%s3081_s10 + $0x74] sm:$0xf] %vm785_vm1, %v3325_v1 }
  0xfa   : > { %1241 = vrot.lane.b32.xlu1 %v3115_v39, %s2966_s14 }
  0xfb   : > { %850 = vrot.lane.b32.xlu0 %v3101_v33, %s2963_s11 }
  0xfe   : > { %852 = vrot.lane.b32.xlu1 %v3129_v45, %s2963_s11 }
  0xff   : > { %946 = vrot.lane.b32.xlu0 %v3093_v30, %s2964_s12 }
 0x102   : > { %948 = vrot.lane.b32.xlu1 %v3121_v42, %s2964_s12 }
 0x103   : > { %978 = vrot.lane.b32.xlu0 %v3101_v33, %s2964_s12 }
 0x106   : > { %980 = vrot.lane.b32.xlu1 %v3129_v45, %s2964_s12 }
 0x107   : > { %1074 = vrot.lane.b32.xlu0 %v3093_v30, %s2965_s13 }
 0x10a   : > { %1076 = vrot.lane.b32.xlu1 %v3121_v42, %s2965_s13 }
 0x10b   : > { %1106 = vrot.lane.b32.xlu0 %v3101_v33, %s2965_s13 }
 0x10e   : > { %1108 = vrot.lane.b32.xlu1 %v3129_v45, %s2965_s13 }
 0x10f   : > { %1203 = vrot.lane.b32.xlu0 %v3093_v30, %s2966_s14 }
 0x112   : > { %1205 = vrot.lane.b32.xlu1 %v3121_v42, %s2966_s14 }
 0x113   : > { %1235 = vrot.lane.b32.xlu0 %v3101_v33, %s2966_s14 }
 0x116   : > { %1237 = vrot.lane.b32.xlu1 %v3129_v45, %s2966_s14 }
 0x117   : > { %820 = vrot.lane.b32.xlu0 %v3121_v42, %s2963_s11 }
 0x11a   : > { %832 = vrot.lane.b32.xlu1 %v3165_v60, %s2963_s11 }
 0x11b   : > { %830 = vrot.lane.b32.xlu0 %v3137_v48, %s2963_s11 }
 0x11e   : > { %864 = vrot.lane.b32.xlu1 %v3171_v63, %s2963_s11 }
 0x11f   : > { %862 = vrot.lane.b32.xlu0 %v3143_v52, %s2963_s11 }
 0x122   : > { %960 = vrot.lane.b32.xlu1 %v3165_v60, %s2964_s12 }
 0x123   : > { %958 = vrot.lane.b32.xlu0 %v3137_v48, %s2964_s12 }
 0x126   : > { %992 = vrot.lane.b32.xlu1 %v3171_v63, %s2964_s12 }
 0x127   : > { %990 = vrot.lane.b32.xlu0 %v3143_v52, %s2964_s12 }
 0x12a   : > { %1088 = vrot.lane.b32.xlu1 %v3165_v60, %s2965_s13 }
 0x12b   : > { %1086 = vrot.lane.b32.xlu0 %v3137_v48, %s2965_s13 }
 0x12e   : > { %1120 = vrot.lane.b32.xlu1 %v3171_v63, %s2965_s13 }
 0x12f   : > { %1118 = vrot.lane.b32.xlu0 %v3143_v52, %s2965_s13 }
 0x132   : > { %1217 = vrot.lane.b32.xlu1 %v3165_v60, %s2966_s14 }
 0x133   : > { %1215 = vrot.lane.b32.xlu0 %v3137_v48, %s2966_s14 }
 0x136   : > { %828 = vrot.lane.b32.xlu1 %v3179_v2, %s2963_s11 }
 0x137   : > { %826 = vrot.lane.b32.xlu0 %v3151_v54, %s2963_s11 }
 0x13a   : > { %860 = vrot.lane.b32.xlu1 %v3187_v5, %s2963_s11 }
 0x13b   : > { %858 = vrot.lane.b32.xlu0 %v3159_v58, %s2963_s11 }
 0x13e   : > { %956 = vrot.lane.b32.xlu1 %v3179_v2, %s2964_s12 }
 0x13f   : > { %954 = vrot.lane.b32.xlu0 %v3151_v54, %s2964_s12 }
 0x142   : > { %988 = vrot.lane.b32.xlu1 %v3187_v5, %s2964_s12 }
 0x143   : > { %986 = vrot.lane.b32.xlu0 %v3159_v58, %s2964_s12 }
 0x146   : > { %1084 = vrot.lane.b32.xlu1 %v3179_v2, %s2965_s13 }
 0x147   : > { %1082 = vrot.lane.b32.xlu0 %v3151_v54, %s2965_s13 }
 0x14a   : > { %1116 = vrot.lane.b32.xlu1 %v3187_v5, %s2965_s13 }
 0x14b   : > { %1114 = vrot.lane.b32.xlu0 %v3159_v58, %s2965_s13 }
 0x14c   : > { %v823_v18 = vpop.permute.xlu1 %822 }
 0x14d   : > { %v855_v3 = vpop.permute.xlu0 %854  ;;  %916 = vst.msk [vmem:[%s3392_s17 + $0x8] sm:$0xf] %vm785_vm1, %v823_v18 }
 0x14e   : > { %932 = vst.msk [vmem:[%s3392_s17 + $0x48] sm:$0xf] %vm785_vm1, %v855_v3  ;;  %1213 = vrot.lane.b32.xlu1 %v3179_v2, %s2966_s14 }
 0x14f   : > { %1211 = vrot.lane.b32.xlu0 %v3151_v54, %s2966_s14 }
 0x150   : > { %v825_v4 = vpop.permute.xlu1 %824 }
 0x151   : > { %v951_v6 = vpop.permute.xlu0 %950  ;;  %917 = vst.msk [vmem:[%s3392_s17 + $0xc] sm:$0xf] %vm785_vm1, %v825_v4 }
 0x152   : > { %1044 = vst.msk [vmem:[%s3408_s23 + $0x8] sm:$0xf] %vm785_vm1, %v951_v6  ;;  %1245 = vrot.lane.b32.xlu1 %v3187_v5, %s2966_s14 }
 0x153   : > { %1243 = vrot.lane.b32.xlu0 %v3159_v58, %s2966_s14 }
 0x154   : > { %v857_v7 = vpop.permute.xlu1 %856 }
 0x155   : > { %v983_v9 = vpop.permute.xlu0 %982  ;;  %933 = vst.msk [vmem:[%s3392_s17 + $0x4c] sm:$0xf] %vm785_vm1, %v857_v7 }
 0x156   : > { %1060 = vst.msk [vmem:[%s3408_s23 + $0x48] sm:$0xf] %vm785_vm1, %v983_v9  ;;  %840 = vrot.lane.b32.xlu1 %v3221_v21, %s2963_s11 }
 0x157   : > { %838 = vrot.lane.b32.xlu0 %v3193_v8, %s2963_s11 }
 0x158   : > { %v953_v10 = vpop.permute.xlu1 %952 }
 0x159   : > { %v1079_v11 = vpop.permute.xlu0 %1078  ;;  %1045 = vst.msk [vmem:[%s3408_s23 + $0xc] sm:$0xf] %vm785_vm1, %v953_v10 }
 0x15a   : > { %2504 = vst.msk [vmem:[%s3081_s10 + $0x88] sm:$0xf] %vm785_vm1, %v1079_v11  ;;  %872 = vrot.lane.b32.xlu1 %v3227_v25, %s2963_s11 }
 0x15b   : > { %870 = vrot.lane.b32.xlu0 %v3199_v12, %s2963_s11 }
 0x15c   : > { %v985_v13 = vpop.permute.xlu1 %984 }
 0x15d   : > { %v1111_v15 = vpop.permute.xlu0 %1110  ;;  %1061 = vst.msk [vmem:[%s3408_s23 + $0x4c] sm:$0xf] %vm785_vm1, %v985_v13 }
 0x15e   : > { %2520 = vst.msk [vmem:[%s3081_s10 + $0xc8] sm:$0xf] %vm785_vm1, %v1111_v15  ;;  %968 = vrot.lane.b32.xlu1 %v3221_v21, %s2964_s12 }
 0x15f   : > { %966 = vrot.lane.b32.xlu0 %v3193_v8, %s2964_s12 }
 0x160   : > { %v1081_v16 = vpop.permute.xlu1 %1080 }
 0x161   : > { %v1208_v17 = vpop.permute.xlu0 %1207  ;;  %2505 = vst.msk [vmem:[%s3081_s10 + $0x8c] sm:$0xf] %vm785_vm1, %v1081_v16 }
 0x162   : > { %2536 = vst.msk [vmem:[%s3392_s17 + $0x88] sm:$0xf] %vm785_vm1, %v1208_v17  ;;  %1000 = vrot.lane.b32.xlu1 %v3227_v25, %s2964_s12 }
 0x163   : > { %998 = vrot.lane.b32.xlu0 %v3199_v12, %s2964_s12 }
 0x164   : > { %v1113_v20 = vpop.permute.xlu1 %1112 }
 0x165   : > { %v1240_v22 = vpop.permute.xlu0 %1239  ;;  %2521 = vst.msk [vmem:[%s3081_s10 + $0xcc] sm:$0xf] %vm785_vm1, %v1113_v20 }
 0x166   : > { %2552 = vst.msk [vmem:[%s3392_s17 + $0xc8] sm:$0xf] %vm785_vm1, %v1240_v22  ;;  %1096 = vrot.lane.b32.xlu1 %v3221_v21, %s2965_s13 }
 0x167   : > { %1094 = vrot.lane.b32.xlu0 %v3193_v8, %s2965_s13 }
 0x168   : > { %v1210_v23 = vpop.permute.xlu1 %1209 }
 0x169   : > { %2537 = vst.msk [vmem:[%s3392_s17 + $0x8c] sm:$0xf] %vm785_vm1, %v1210_v23  ;;  %v819_v26 = vpop.permute.xlu0 %818 }
 0x16a   : > { %914 = vst.msk [vmem:[%s3392_s17] sm:$0xf] %vm785_vm1, %v819_v26  ;;  %1128 = vrot.lane.b32.xlu1 %v3227_v25, %s2965_s13 }
 0x16b   : > { %1126 = vrot.lane.b32.xlu0 %v3199_v12, %s2965_s13 }
 0x16c   : > { %v1242_v31 = vpop.permute.xlu1 %1241 }
 0x16d   : > { %2553 = vst.msk [vmem:[%s3392_s17 + $0xcc] sm:$0xf] %vm785_vm1, %v1242_v31  ;;  %v851_v32 = vpop.permute.xlu0 %850 }
 0x16e   : > { %930 = vst.msk [vmem:[%s3392_s17 + $0x40] sm:$0xf] %vm785_vm1, %v851_v32  ;;  %1225 = vrot.lane.b32.xlu1 %v3221_v21, %s2966_s14 }
 0x16f   : > { %1223 = vrot.lane.b32.xlu0 %v3193_v8, %s2966_s14 }
 0x170   : > { %v853_v35 = vpop.permute.xlu1 %852 }
 0x171   : > { %931 = vst.msk [vmem:[%s3392_s17 + $0x44] sm:$0xf] %vm785_vm1, %v853_v35  ;;  %v947_v37 = vpop.permute.xlu0 %946 }
 0x172   : > { %1042 = vst.msk [vmem:[%s3408_s23] sm:$0xf] %vm785_vm1, %v947_v37  ;;  %836 = vrot.lane.b32.xlu1 %v3235_v28, %s2963_s11 }
 0x173   : > { %834 = vrot.lane.b32.xlu0 %v3207_v14, %s2963_s11 }
 0x174   : > { %v949_v38 = vpop.permute.xlu1 %948 }
 0x175   : > { %1043 = vst.msk [vmem:[%s3408_s23 + $0x4] sm:$0xf] %vm785_vm1, %v949_v38  ;;  %v979_v40 = vpop.permute.xlu0 %978 }
 0x176   : > { %1058 = vst.msk [vmem:[%s3408_s23 + $0x40] sm:$0xf] %vm785_vm1, %v979_v40  ;;  %868 = vrot.lane.b32.xlu1 %v3242_v29, %s2963_s11 }
 0x177   : > { %866 = vrot.lane.b32.xlu0 %v3215_v19, %s2963_s11 }
 0x178   : > { %v981_v41 = vpop.permute.xlu1 %980 }
 0x179   : > { %1059 = vst.msk [vmem:[%s3408_s23 + $0x44] sm:$0xf] %vm785_vm1, %v981_v41  ;;  %v1075_v44 = vpop.permute.xlu0 %1074 }
 0x17a   : > { %2502 = vst.msk [vmem:[%s3081_s10 + $0x80] sm:$0xf] %vm785_vm1, %v1075_v44  ;;  %964 = vrot.lane.b32.xlu1 %v3235_v28, %s2964_s12 }
 0x17b   : > { %962 = vrot.lane.b32.xlu0 %v3207_v14, %s2964_s12 }
 0x17c   : > { %v1077_v47 = vpop.permute.xlu1 %1076 }
 0x17d   : > { %2503 = vst.msk [vmem:[%s3081_s10 + $0x84] sm:$0xf] %vm785_vm1, %v1077_v47  ;;  %v1107_v49 = vpop.permute.xlu0 %1106 }
 0x17e   : > { %2518 = vst.msk [vmem:[%s3081_s10 + $0xc0] sm:$0xf] %vm785_vm1, %v1107_v49  ;;  %996 = vrot.lane.b32.xlu1 %v3242_v29, %s2964_s12 }
 0x17f   : > { %994 = vrot.lane.b32.xlu0 %v3215_v19, %s2964_s12 }
 0x180   : > { %v1109_v51 = vpop.permute.xlu1 %1108 }
 0x181   : > { %2519 = vst.msk [vmem:[%s3081_s10 + $0xc4] sm:$0xf] %vm785_vm1, %v1109_v51  ;;  %v1204_v53 = vpop.permute.xlu0 %1203 }
 0x182   : > { %2534 = vst.msk [vmem:[%s3392_s17 + $0x80] sm:$0xf] %vm785_vm1, %v1204_v53  ;;  %1092 = vrot.lane.b32.xlu1 %v3235_v28, %s2965_s13 }
 0x183   : > { %1090 = vrot.lane.b32.xlu0 %v3207_v14, %s2965_s13 }
 0x184   : > { %v1206_v55 = vpop.permute.xlu1 %1205 }
 0x185   : > { %2535 = vst.msk [vmem:[%s3392_s17 + $0x84] sm:$0xf] %vm785_vm1, %v1206_v55  ;;  %v1236_v59 = vpop.permute.xlu0 %1235 }
 0x186   : > { %2550 = vst.msk [vmem:[%s3392_s17 + $0xc0] sm:$0xf] %vm785_vm1, %v1236_v59  ;;  %1124 = vrot.lane.b32.xlu1 %v3242_v29, %s2965_s13 }
 0x187   : > { %1122 = vrot.lane.b32.xlu0 %v3215_v19, %s2965_s13 }
 0x188   : > { %v1238_v61 = vpop.permute.xlu1 %1237 }
 0x189   : > { %2551 = vst.msk [vmem:[%s3392_s17 + $0xc4] sm:$0xf] %vm785_vm1, %v1238_v61  ;;  %v821_v0 = vpop.permute.xlu0 %820 }
 0x18a   : > { %915 = vst.msk [vmem:[%s3392_s17 + $0x4] sm:$0xf] %vm785_vm1, %v821_v0  ;;  %1221 = vrot.lane.b32.xlu1 %v3235_v28, %s2966_s14 }
 0x18b   : > { %1219 = vrot.lane.b32.xlu0 %v3207_v14, %s2966_s14 }
 0x18c   : > { %v833_v18 = vpop.permute.xlu1 %832 }
 0x18d   : > { %921 = vst.msk [vmem:[%s3392_s17 + $0x1c] sm:$0xf] %vm785_vm1, %v833_v18  ;;  %v831_v3 = vpop.permute.xlu0 %830 }
 0x18e   : > { %920 = vst.msk [vmem:[%s3392_s17 + $0x18] sm:$0xf] %vm785_vm1, %v831_v3  ;;  %1249 = vrot.lane.b32.xlu1 %v3171_v63, %s2966_s14 }
 0x18f   : > { %846 = vrot.lane.b32.xlu0 %v3273_v34, %s2963_s11 }
 0x190   : > { %v865_v4 = vpop.permute.xlu1 %864 }
 0x191   : > { %937 = vst.msk [vmem:[%s3392_s17 + $0x5c] sm:$0xf] %vm785_vm1, %v865_v4  ;;  %v863_v6 = vpop.permute.xlu0 %862 }
 0x192   : > { %936 = vst.msk [vmem:[%s3392_s17 + $0x58] sm:$0xf] %vm785_vm1, %v863_v6  ;;  %848 = vrot.lane.b32.xlu1 %v3294_v50, %s2963_s11 }
 0x193   : > { %878 = vrot.lane.b32.xlu0 %v3287_v46, %s2963_s11 }
 0x194   : > { %v961_v7 = vpop.permute.xlu1 %960 }
 0x195   : > { %1049 = vst.msk [vmem:[%s3408_s23 + $0x1c] sm:$0xf] %vm785_vm1, %v961_v7  ;;  %v959_v9 = vpop.permute.xlu0 %958 }
 0x196   : > { %1048 = vst.msk [vmem:[%s3408_s23 + $0x18] sm:$0xf] %vm785_vm1, %v959_v9  ;;  %880 = vrot.lane.b32.xlu1 %v3319_v62, %s2963_s11 }
 0x197   : > { %974 = vrot.lane.b32.xlu0 %v3273_v34, %s2964_s12 }
 0x198   : > { %v993_v10 = vpop.permute.xlu1 %992 }
 0x199   : > { %1065 = vst.msk [vmem:[%s3408_s23 + $0x5c] sm:$0xf] %vm785_vm1, %v993_v10  ;;  %v991_v11 = vpop.permute.xlu0 %990 }
 0x19a   : > { %1064 = vst.msk [vmem:[%s3408_s23 + $0x58] sm:$0xf] %vm785_vm1, %v991_v11  ;;  %976 = vrot.lane.b32.xlu1 %v3294_v50, %s2964_s12 }
 0x19b   : > { %1006 = vrot.lane.b32.xlu0 %v3287_v46, %s2964_s12 }
 0x19c   : > { %v1089_v13 = vpop.permute.xlu1 %1088 }
 0x19d   : > { %2509 = vst.msk [vmem:[%s3081_s10 + $0x9c] sm:$0xf] %vm785_vm1, %v1089_v13  ;;  %v1087_v15 = vpop.permute.xlu0 %1086 }
 0x19e   : > { %2508 = vst.msk [vmem:[%s3081_s10 + $0x98] sm:$0xf] %vm785_vm1, %v1087_v15  ;;  %1008 = vrot.lane.b32.xlu1 %v3319_v62, %s2964_s12 }
 0x19f   : > { %1102 = vrot.lane.b32.xlu0 %v3273_v34, %s2965_s13 }
 0x1a0   : > { %v1121_v16 = vpop.permute.xlu1 %1120 }
 0x1a1   : > { %2525 = vst.msk [vmem:[%s3081_s10 + $0xdc] sm:$0xf] %vm785_vm1, %v1121_v16  ;;  %v1119_v17 = vpop.permute.xlu0 %1118 }
 0x1a2   : > { %2524 = vst.msk [vmem:[%s3081_s10 + $0xd8] sm:$0xf] %vm785_vm1, %v1119_v17  ;;  %1104 = vrot.lane.b32.xlu1 %v3294_v50, %s2965_s13 }
 0x1a3   : > { %1134 = vrot.lane.b32.xlu0 %v3287_v46, %s2965_s13 }
 0x1a4   : > { %v1218_v20 = vpop.permute.xlu1 %1217 }
 0x1a5   : > { %2541 = vst.msk [vmem:[%s3392_s17 + $0x9c] sm:$0xf] %vm785_vm1, %v1218_v20  ;;  %v1216_v22 = vpop.permute.xlu0 %1215 }
 0x1a6   : > { %2540 = vst.msk [vmem:[%s3392_s17 + $0x98] sm:$0xf] %vm785_vm1, %v1216_v22  ;;  %1136 = vrot.lane.b32.xlu1 %v3319_v62, %s2965_s13 }
 0x1a7   : > { %1231 = vrot.lane.b32.xlu0 %v3273_v34, %s2966_s14 }
 0x1a8   : > { %v829_v23 = vpop.permute.xlu1 %828 }
 0x1a9   : > { %919 = vst.msk [vmem:[%s3392_s17 + $0x14] sm:$0xf] %vm785_vm1, %v829_v23  ;;  %v827_v26 = vpop.permute.xlu0 %826 }
 0x1aa   : > { %918 = vst.msk [vmem:[%s3392_s17 + $0x10] sm:$0xf] %vm785_vm1, %v827_v26  ;;  %1233 = vrot.lane.b32.xlu1 %v3294_v50, %s2966_s14 }
 0x1ab   : > { %842 = vrot.lane.b32.xlu0 %v3282_v43, %s2963_s11 }
 0x1ac   : > { %v861_v31 = vpop.permute.xlu1 %860 }
 0x1ad   : > { %935 = vst.msk [vmem:[%s3392_s17 + $0x54] sm:$0xf] %vm785_vm1, %v861_v31  ;;  %v859_v32 = vpop.permute.xlu0 %858 }
 0x1ae   : > { %934 = vst.msk [vmem:[%s3392_s17 + $0x50] sm:$0xf] %vm785_vm1, %v859_v32  ;;  %844 = vrot.lane.b32.xlu1 %v3304_v56, %s2963_s11 }
 0x1af   : > { %874 = vrot.lane.b32.xlu0 %v3306_v57, %s2963_s11 }
 0x1b0   : > { %v957_v35 = vpop.permute.xlu1 %956 }
 0x1b1   : > { %1047 = vst.msk [vmem:[%s3408_s23 + $0x14] sm:$0xf] %vm785_vm1, %v957_v35  ;;  %v955_v37 = vpop.permute.xlu0 %954 }
 0x1b2   : > { %1046 = vst.msk [vmem:[%s3408_s23 + $0x10] sm:$0xf] %vm785_vm1, %v955_v37  ;;  %876 = vrot.lane.b32.xlu1 %v3325_v1, %s2963_s11 }
 0x1b3   : > { %970 = vrot.lane.b32.xlu0 %v3282_v43, %s2964_s12 }
 0x1b4   : > { %v989_v38 = vpop.permute.xlu1 %988 }
 0x1b5   : > { %1063 = vst.msk [vmem:[%s3408_s23 + $0x54] sm:$0xf] %vm785_vm1, %v989_v38  ;;  %v987_v40 = vpop.permute.xlu0 %986 }
 0x1b6   : > { %1062 = vst.msk [vmem:[%s3408_s23 + $0x50] sm:$0xf] %vm785_vm1, %v987_v40  ;;  %972 = vrot.lane.b32.xlu1 %v3304_v56, %s2964_s12 }
 0x1b7   : > { %1002 = vrot.lane.b32.xlu0 %v3306_v57, %s2964_s12 }
 0x1b8   : > { %v1085_v41 = vpop.permute.xlu1 %1084 }
 0x1b9   : > { %2507 = vst.msk [vmem:[%s3081_s10 + $0x94] sm:$0xf] %vm785_vm1, %v1085_v41  ;;  %v1083_v44 = vpop.permute.xlu0 %1082 }
 0x1ba   : > { %2506 = vst.msk [vmem:[%s3081_s10 + $0x90] sm:$0xf] %vm785_vm1, %v1083_v44  ;;  %1004 = vrot.lane.b32.xlu1 %v3325_v1, %s2964_s12 }
 0x1bb   : > { %1098 = vrot.lane.b32.xlu0 %v3282_v43, %s2965_s13 }
 0x1bc   : > { %v1117_v47 = vpop.permute.xlu1 %1116 }
 0x1bd   : > { %2523 = vst.msk [vmem:[%s3081_s10 + $0xd4] sm:$0xf] %vm785_vm1, %v1117_v47  ;;  %v1115_v49 = vpop.permute.xlu0 %1114 }
 0x1be   : > { %2522 = vst.msk [vmem:[%s3081_s10 + $0xd0] sm:$0xf] %vm785_vm1, %v1115_v49  ;;  %1100 = vrot.lane.b32.xlu1 %v3304_v56, %s2965_s13 }
 0x1bf   : > { %1130 = vrot.lane.b32.xlu0 %v3306_v57, %s2965_s13 }
 0x1c0   : > { %v1214_v51 = vpop.permute.xlu1 %1213 }
 0x1c1   : > { %2539 = vst.msk [vmem:[%s3392_s17 + $0x94] sm:$0xf] %vm785_vm1, %v1214_v51  ;;  %v1212_v53 = vpop.permute.xlu0 %1211 }
 0x1c2   : > { %2538 = vst.msk [vmem:[%s3392_s17 + $0x90] sm:$0xf] %vm785_vm1, %v1212_v53  ;;  %1132 = vrot.lane.b32.xlu1 %v3325_v1, %s2965_s13 }
 0x1c3   : > { %1227 = vrot.lane.b32.xlu0 %v3282_v43, %s2966_s14 }
 0x1c4   : > { %v1246_v55 = vpop.permute.xlu1 %1245 }
 0x1c5   : > { %2555 = vst.msk [vmem:[%s3392_s17 + $0xd4] sm:$0xf] %vm785_vm1, %v1246_v55  ;;  %v1244_v59 = vpop.permute.xlu0 %1243 }
 0x1c6   : > { %2554 = vst.msk [vmem:[%s3392_s17 + $0xd0] sm:$0xf] %vm785_vm1, %v1244_v59  ;;  %1229 = vrot.lane.b32.xlu1 %v3304_v56, %s2966_s14 }
 0x1c7   : > { %1247 = vrot.lane.b32.xlu0 %v3143_v52, %s2966_s14 }
 0x1c8   : > { %v841_v61 = vpop.permute.xlu1 %840 }
 0x1c9   : > { %925 = vst.msk [vmem:[%s3392_s17 + $0x2c] sm:$0xf] %vm785_vm1, %v841_v61  ;;  %v839_v0 = vpop.permute.xlu0 %838 }
 0x1ca   : > { %924 = vst.msk [vmem:[%s3392_s17 + $0x28] sm:$0xf] %vm785_vm1, %v839_v0  ;;  %1253 = vrot.lane.b32.xlu1 %v3242_v29, %s2966_s14 }
 0x1cb   : > { %1251 = vrot.lane.b32.xlu0 %v3215_v19, %s2966_s14 }
 0x1cc   : > { %v873_v18 = vpop.permute.xlu1 %872 }
 0x1cd   : > { %941 = vst.msk [vmem:[%s3392_s17 + $0x6c] sm:$0xf] %vm785_vm1, %v873_v18  ;;  %v871_v3 = vpop.permute.xlu0 %870 }
 0x1ce   : > { %940 = vst.msk [vmem:[%s3392_s17 + $0x68] sm:$0xf] %vm785_vm1, %v871_v3  ;;  %1257 = vrot.lane.b32.xlu1 %v3227_v25, %s2966_s14 }
 0x1cf   : > { %1255 = vrot.lane.b32.xlu0 %v3199_v12, %s2966_s14 }
 0x1d0   : > { %v969_v4 = vpop.permute.xlu1 %968 }
 0x1d1   : > { %1053 = vst.msk [vmem:[%s3408_s23 + $0x2c] sm:$0xf] %vm785_vm1, %v969_v4  ;;  %v967_v6 = vpop.permute.xlu0 %966 }
 0x1d2   : > { %1052 = vst.msk [vmem:[%s3408_s23 + $0x28] sm:$0xf] %vm785_vm1, %v967_v6  ;;  %1261 = vrot.lane.b32.xlu1 %v3325_v1, %s2966_s14 }
 0x1d3   : > { %1259 = vrot.lane.b32.xlu0 %v3306_v57, %s2966_s14 }
 0x1d4   : > { %v1001_v7 = vpop.permute.xlu1 %1000 }
 0x1d5   : > { %1069 = vst.msk [vmem:[%s3408_s23 + $0x6c] sm:$0xf] %vm785_vm1, %v1001_v7  ;;  %v999_v9 = vpop.permute.xlu0 %998 }
 0x1d6   : > { %1068 = vst.msk [vmem:[%s3408_s23 + $0x68] sm:$0xf] %vm785_vm1, %v999_v9  ;;  %1265 = vrot.lane.b32.xlu1 %v3319_v62, %s2966_s14 }
 0x1d7   : > { %1263 = vrot.lane.b32.xlu0 %v3287_v46, %s2966_s14 }
 0x1d8   : > { %v1097_v10 = vpop.permute.xlu1 %1096 }
 0x1d9   : > { %2513 = vst.msk [vmem:[%s3081_s10 + $0xac] sm:$0xf] %vm785_vm1, %v1097_v10  ;;  %v1095_v11 = vpop.permute.xlu0 %1094 }
 0x1da   : > { %2512 = vst.msk [vmem:[%s3081_s10 + $0xa8] sm:$0xf] %vm785_vm1, %v1095_v11  ;;  %1334 = vrot.lane.b32.xlu1 %v3121_v42, %s2967_s24 }
 0x1db   : > { %1332 = vrot.lane.b32.xlu0 %v3093_v30, %s2967_s24 }
 0x1dc   : > { %v1129_v13 = vpop.permute.xlu1 %1128 }
 0x1dd   : > { %2529 = vst.msk [vmem:[%s3081_s10 + $0xec] sm:$0xf] %vm785_vm1, %v1129_v13  ;;  %v1127_v15 = vpop.permute.xlu0 %1126 }
 0x1de   : > { %2528 = vst.msk [vmem:[%s3081_s10 + $0xe8] sm:$0xf] %vm785_vm1, %v1127_v15  ;;  %1338 = vrot.lane.b32.xlu1 %v3109_v36, %s2967_s24 }
 0x1df   : > { %1336 = vrot.lane.b32.xlu0 %v3084_v24, %s2967_s24 }
 0x1e0   : > { %v1226_v16 = vpop.permute.xlu1 %1225 }
 0x1e1   : > { %2545 = vst.msk [vmem:[%s3392_s17 + $0xac] sm:$0xf] %vm785_vm1, %v1226_v16  ;;  %v1224_v17 = vpop.permute.xlu0 %1223 }
 0x1e2   : > { %2544 = vst.msk [vmem:[%s3392_s17 + $0xa8] sm:$0xf] %vm785_vm1, %v1224_v17  ;;  %1342 = vrot.lane.b32.xlu1 %v3179_v2, %s2967_s24 }
 0x1e3   : > { %1340 = vrot.lane.b32.xlu0 %v3151_v54, %s2967_s24 }
 0x1e4   : > { %v837_v20 = vpop.permute.xlu1 %836 }
 0x1e5   : > { %923 = vst.msk [vmem:[%s3392_s17 + $0x24] sm:$0xf] %vm785_vm1, %v837_v20  ;;  %v835_v22 = vpop.permute.xlu0 %834 }
 0x1e6   : > { %922 = vst.msk [vmem:[%s3392_s17 + $0x20] sm:$0xf] %vm785_vm1, %v835_v22  ;;  %1346 = vrot.lane.b32.xlu1 %v3165_v60, %s2967_s24 }
 0x1e7   : > { %1344 = vrot.lane.b32.xlu0 %v3137_v48, %s2967_s24 }
 0x1e8   : > { %v869_v23 = vpop.permute.xlu1 %868 }
 0x1e9   : > { %939 = vst.msk [vmem:[%s3392_s17 + $0x64] sm:$0xf] %vm785_vm1, %v869_v23  ;;  %v867_v26 = vpop.permute.xlu0 %866 }
 0x1ea   : > { %938 = vst.msk [vmem:[%s3392_s17 + $0x60] sm:$0xf] %vm785_vm1, %v867_v26  ;;  %1350 = vrot.lane.b32.xlu1 %v3235_v28, %s2967_s24 }
 0x1eb   : > { %1348 = vrot.lane.b32.xlu0 %v3207_v14, %s2967_s24 }
 0x1ec   : > { %v965_v31 = vpop.permute.xlu1 %964 }
 0x1ed   : > { %1051 = vst.msk [vmem:[%s3408_s23 + $0x24] sm:$0xf] %vm785_vm1, %v965_v31  ;;  %v963_v32 = vpop.permute.xlu0 %962 }
 0x1ee   : > { %1050 = vst.msk [vmem:[%s3408_s23 + $0x20] sm:$0xf] %vm785_vm1, %v963_v32  ;;  %1354 = vrot.lane.b32.xlu1 %v3221_v21, %s2967_s24 }
 0x1ef   : > { %1352 = vrot.lane.b32.xlu0 %v3193_v8, %s2967_s24 }
 0x1f0   : > { %v997_v35 = vpop.permute.xlu1 %996 }
 0x1f1   : > { %1067 = vst.msk [vmem:[%s3408_s23 + $0x64] sm:$0xf] %vm785_vm1, %v997_v35  ;;  %v995_v37 = vpop.permute.xlu0 %994 }
 0x1f2   : > { %1066 = vst.msk [vmem:[%s3408_s23 + $0x60] sm:$0xf] %vm785_vm1, %v995_v37  ;;  %1358 = vrot.lane.b32.xlu1 %v3304_v56, %s2967_s24 }
 0x1f3   : > { %1356 = vrot.lane.b32.xlu0 %v3282_v43, %s2967_s24 }
 0x1f4   : > { %v1093_v38 = vpop.permute.xlu1 %1092 }
 0x1f5   : > { %2511 = vst.msk [vmem:[%s3081_s10 + $0xa4] sm:$0xf] %vm785_vm1, %v1093_v38  ;;  %v1091_v40 = vpop.permute.xlu0 %1090 }
 0x1f6   : > { %2510 = vst.msk [vmem:[%s3081_s10 + $0xa0] sm:$0xf] %vm785_vm1, %v1091_v40  ;;  %1362 = vrot.lane.b32.xlu1 %v3294_v50, %s2967_s24 }
 0x1f7   : > { %1360 = vrot.lane.b32.xlu0 %v3273_v34, %s2967_s24 }
 0x1f8   : > { %v1125_v41 = vpop.permute.xlu1 %1124 }
 0x1f9   : > { %2527 = vst.msk [vmem:[%s3081_s10 + $0xe4] sm:$0xf] %vm785_vm1, %v1125_v41  ;;  %v1123_v44 = vpop.permute.xlu0 %1122 }
 0x1fa   : > { %2526 = vst.msk [vmem:[%s3081_s10 + $0xe0] sm:$0xf] %vm785_vm1, %v1123_v44  ;;  %1366 = vrot.lane.b32.xlu1 %v3129_v45, %s2967_s24 }
 0x1fb   : > { %1364 = vrot.lane.b32.xlu0 %v3101_v33, %s2967_s24 }
 0x1fc   : > { %v1222_v47 = vpop.permute.xlu1 %1221 }
 0x1fd   : > { %2543 = vst.msk [vmem:[%s3392_s17 + $0xa4] sm:$0xf] %vm785_vm1, %v1222_v47  ;;  %v1220_v49 = vpop.permute.xlu0 %1219 }
 0x1fe   : > { %2542 = vst.msk [vmem:[%s3392_s17 + $0xa0] sm:$0xf] %vm785_vm1, %v1220_v49  ;;  %1370 = vrot.lane.b32.xlu1 %v3115_v39, %s2967_s24 }
 0x1ff   : > { %1368 = vrot.lane.b32.xlu0 %v3087_v27, %s2967_s24 }
 0x200   : > { %v1250_v51 = vpop.permute.xlu1 %1249 }
 0x201   : > { %2557 = vst.msk [vmem:[%s3392_s17 + $0xdc] sm:$0xf] %vm785_vm1, %v1250_v51  ;;  %v847_v53 = vpop.permute.xlu0 %846 }
 0x202   : > { %928 = vst.msk [vmem:[%s3392_s17 + $0x38] sm:$0xf] %vm785_vm1, %v847_v53  ;;  %1374 = vrot.lane.b32.xlu1 %v3187_v5, %s2967_s24 }
 0x203   : > { %1372 = vrot.lane.b32.xlu0 %v3159_v58, %s2967_s24 }
 0x204   : > { %v849_v55 = vpop.permute.xlu1 %848 }
 0x205   : > { %929 = vst.msk [vmem:[%s3392_s17 + $0x3c] sm:$0xf] %vm785_vm1, %v849_v55  ;;  %v879_v59 = vpop.permute.xlu0 %878 }
 0x206   : > { %944 = vst.msk [vmem:[%s3392_s17 + $0x78] sm:$0xf] %vm785_vm1, %v879_v59  ;;  %1378 = vrot.lane.b32.xlu1 %v3171_v63, %s2967_s24 }
 0x207   : > { %1376 = vrot.lane.b32.xlu0 %v3143_v52, %s2967_s24 }
 0x208   : > { %v881_v61 = vpop.permute.xlu1 %880 }
 0x209   : > { %945 = vst.msk [vmem:[%s3392_s17 + $0x7c] sm:$0xf] %vm785_vm1, %v881_v61  ;;  %v975_v0 = vpop.permute.xlu0 %974 }
 0x20a   : > { %1056 = vst.msk [vmem:[%s3408_s23 + $0x38] sm:$0xf] %vm785_vm1, %v975_v0  ;;  %1382 = vrot.lane.b32.xlu1 %v3242_v29, %s2967_s24 }
 0x20b   : > { %1380 = vrot.lane.b32.xlu0 %v3215_v19, %s2967_s24 }
 0x20c   : > { %v977_v18 = vpop.permute.xlu1 %976 }
 0x20d   : > { %1057 = vst.msk [vmem:[%s3408_s23 + $0x3c] sm:$0xf] %vm785_vm1, %v977_v18  ;;  %v1007_v3 = vpop.permute.xlu0 %1006 }
 0x20e   : > { %1072 = vst.msk [vmem:[%s3408_s23 + $0x78] sm:$0xf] %vm785_vm1, %v1007_v3  ;;  %1386 = vrot.lane.b32.xlu1 %v3227_v25, %s2967_s24 }
 0x20f   : > { %1384 = vrot.lane.b32.xlu0 %v3199_v12, %s2967_s24 }
 0x210   : > { %v1009_v4 = vpop.permute.xlu1 %1008 }
 0x211   : > { %1073 = vst.msk [vmem:[%s3408_s23 + $0x7c] sm:$0xf] %vm785_vm1, %v1009_v4  ;;  %v1103_v6 = vpop.permute.xlu0 %1102 }
 0x212   : > { %2516 = vst.msk [vmem:[%s3081_s10 + $0xb8] sm:$0xf] %vm785_vm1, %v1103_v6  ;;  %1390 = vrot.lane.b32.xlu1 %v3325_v1, %s2967_s24 }
 0x213   : > { %1388 = vrot.lane.b32.xlu0 %v3306_v57, %s2967_s24 }
 0x214   : > { %v1105_v7 = vpop.permute.xlu1 %1104 }
 0x215   : > { %2517 = vst.msk [vmem:[%s3081_s10 + $0xbc] sm:$0xf] %vm785_vm1, %v1105_v7  ;;  %v1135_v9 = vpop.permute.xlu0 %1134 }
 0x216   : > { %2532 = vst.msk [vmem:[%s3081_s10 + $0xf8] sm:$0xf] %vm785_vm1, %v1135_v9  ;;  %1394 = vrot.lane.b32.xlu1 %v3319_v62, %s2967_s24 }
 0x217   : > { %1392 = vrot.lane.b32.xlu0 %v3287_v46, %s2967_s24 }
 0x218   : > { %v1137_v10 = vpop.permute.xlu1 %1136 }
 0x219   : > { %2533 = vst.msk [vmem:[%s3081_s10 + $0xfc] sm:$0xf] %vm785_vm1, %v1137_v10  ;;  %v1232_v11 = vpop.permute.xlu0 %1231 }
 0x21a   : > { %2548 = vst.msk [vmem:[%s3392_s17 + $0xb8] sm:$0xf] %vm785_vm1, %v1232_v11  ;;  %1463 = vrot.lane.b32.xlu1 %v3121_v42, %s2968_s25 }
 0x21b   : > { %1461 = vrot.lane.b32.xlu0 %v3093_v30, %s2968_s25 }
 0x21c   : > { %v1234_v13 = vpop.permute.xlu1 %1233 }
 0x21d   : > { %2549 = vst.msk [vmem:[%s3392_s17 + $0xbc] sm:$0xf] %vm785_vm1, %v1234_v13  ;;  %v843_v15 = vpop.permute.xlu0 %842 }
 0x21e   : > { %926 = vst.msk [vmem:[%s3392_s17 + $0x30] sm:$0xf] %vm785_vm1, %v843_v15  ;;  %1467 = vrot.lane.b32.xlu1 %v3109_v36, %s2968_s25 }
 0x21f   : > { %1465 = vrot.lane.b32.xlu0 %v3084_v24, %s2968_s25 }
 0x220   : > { %v845_v16 = vpop.permute.xlu1 %844 }
 0x221   : > { %927 = vst.msk [vmem:[%s3392_s17 + $0x34] sm:$0xf] %vm785_vm1, %v845_v16  ;;  %v875_v17 = vpop.permute.xlu0 %874 }
 0x222   : > { %942 = vst.msk [vmem:[%s3392_s17 + $0x70] sm:$0xf] %vm785_vm1, %v875_v17  ;;  %1471 = vrot.lane.b32.xlu1 %v3179_v2, %s2968_s25 }
 0x223   : > { %1469 = vrot.lane.b32.xlu0 %v3151_v54, %s2968_s25 }
 0x224   : > { %v877_v20 = vpop.permute.xlu1 %876 }
 0x225   : > { %943 = vst.msk [vmem:[%s3392_s17 + $0x74] sm:$0xf] %vm785_vm1, %v877_v20  ;;  %v971_v22 = vpop.permute.xlu0 %970 }
 0x226   : > { %1054 = vst.msk [vmem:[%s3408_s23 + $0x30] sm:$0xf] %vm785_vm1, %v971_v22  ;;  %1475 = vrot.lane.b32.xlu1 %v3165_v60, %s2968_s25 }
 0x227   : > { %1473 = vrot.lane.b32.xlu0 %v3137_v48, %s2968_s25 }
 0x228   : > { %v973_v23 = vpop.permute.xlu1 %972 }
 0x229   : > { %1055 = vst.msk [vmem:[%s3408_s23 + $0x34] sm:$0xf] %vm785_vm1, %v973_v23  ;;  %v1003_v26 = vpop.permute.xlu0 %1002 }
 0x22a   : > { %1070 = vst.msk [vmem:[%s3408_s23 + $0x70] sm:$0xf] %vm785_vm1, %v1003_v26  ;;  %1479 = vrot.lane.b32.xlu1 %v3235_v28, %s2968_s25 }
 0x22b   : > { %1477 = vrot.lane.b32.xlu0 %v3207_v14, %s2968_s25 }
 0x22c   : > { %v1005_v31 = vpop.permute.xlu1 %1004 }
 0x22d   : > { %1071 = vst.msk [vmem:[%s3408_s23 + $0x74] sm:$0xf] %vm785_vm1, %v1005_v31  ;;  %v1099_v32 = vpop.permute.xlu0 %1098 }
 0x22e   : > { %2514 = vst.msk [vmem:[%s3081_s10 + $0xb0] sm:$0xf] %vm785_vm1, %v1099_v32  ;;  %1483 = vrot.lane.b32.xlu1 %v3221_v21, %s2968_s25 }
 0x22f   : > { %1481 = vrot.lane.b32.xlu0 %v3193_v8, %s2968_s25 }
 0x230   : > { %v1101_v35 = vpop.permute.xlu1 %1100 }
 0x231   : > { %2515 = vst.msk [vmem:[%s3081_s10 + $0xb4] sm:$0xf] %vm785_vm1, %v1101_v35  ;;  %v1131_v37 = vpop.permute.xlu0 %1130 }
 0x232   : > { %2530 = vst.msk [vmem:[%s3081_s10 + $0xf0] sm:$0xf] %vm785_vm1, %v1131_v37  ;;  %1487 = vrot.lane.b32.xlu1 %v3304_v56, %s2968_s25 }
 0x233   : > { %1485 = vrot.lane.b32.xlu0 %v3282_v43, %s2968_s25 }
 0x234   : > { %v1133_v38 = vpop.permute.xlu1 %1132 }
 0x235   : > { %2531 = vst.msk [vmem:[%s3081_s10 + $0xf4] sm:$0xf] %vm785_vm1, %v1133_v38  ;;  %v1228_v40 = vpop.permute.xlu0 %1227 }
 0x236   : > { %2546 = vst.msk [vmem:[%s3392_s17 + $0xb0] sm:$0xf] %vm785_vm1, %v1228_v40  ;;  %1491 = vrot.lane.b32.xlu1 %v3294_v50, %s2968_s25 }
 0x237   : > { %1489 = vrot.lane.b32.xlu0 %v3273_v34, %s2968_s25 }
 0x238   : > { %v1230_v41 = vpop.permute.xlu1 %1229 }
 0x239   : > { %2547 = vst.msk [vmem:[%s3392_s17 + $0xb4] sm:$0xf] %vm785_vm1, %v1230_v41  ;;  %v1248_v44 = vpop.permute.xlu0 %1247 }
 0x23a   : > { %2556 = vst.msk [vmem:[%s3392_s17 + $0xd8] sm:$0xf] %vm785_vm1, %v1248_v44  ;;  %1495 = vrot.lane.b32.xlu1 %v3129_v45, %s2968_s25 }
 0x23b   : > { %1493 = vrot.lane.b32.xlu0 %v3101_v33, %s2968_s25 }
 0x23c   : > { %v1254_v47 = vpop.permute.xlu1 %1253 }
 0x23d   : > { %2559 = vst.msk [vmem:[%s3392_s17 + $0xe4] sm:$0xf] %vm785_vm1, %v1254_v47  ;;  %v1252_v49 = vpop.permute.xlu0 %1251 }
 0x23e   : > { %2558 = vst.msk [vmem:[%s3392_s17 + $0xe0] sm:$0xf] %vm785_vm1, %v1252_v49  ;;  %1499 = vrot.lane.b32.xlu1 %v3115_v39, %s2968_s25 }
 0x23f   : > { %1497 = vrot.lane.b32.xlu0 %v3087_v27, %s2968_s25 }
 0x240   : > { %v1258_v51 = vpop.permute.xlu1 %1257 }
 0x241   : > { %2561 = vst.msk [vmem:[%s3392_s17 + $0xec] sm:$0xf] %vm785_vm1, %v1258_v51  ;;  %v1256_v53 = vpop.permute.xlu0 %1255 }
 0x242   : > { %2560 = vst.msk [vmem:[%s3392_s17 + $0xe8] sm:$0xf] %vm785_vm1, %v1256_v53  ;;  %1503 = vrot.lane.b32.xlu1 %v3187_v5, %s2968_s25 }
 0x243   : > { %1501 = vrot.lane.b32.xlu0 %v3159_v58, %s2968_s25 }
 0x244   : > { %v1262_v55 = vpop.permute.xlu1 %1261 }
 0x245   : > { %2563 = vst.msk [vmem:[%s3392_s17 + $0xf4] sm:$0xf] %vm785_vm1, %v1262_v55  ;;  %v1260_v59 = vpop.permute.xlu0 %1259 }
 0x246   : > { %2562 = vst.msk [vmem:[%s3392_s17 + $0xf0] sm:$0xf] %vm785_vm1, %v1260_v59  ;;  %1507 = vrot.lane.b32.xlu1 %v3171_v63, %s2968_s25 }
 0x247   : > { %1505 = vrot.lane.b32.xlu0 %v3143_v52, %s2968_s25 }
 0x248   : > { %v1266_v61 = vpop.permute.xlu1 %1265 }
 0x249   : > { %2565 = vst.msk [vmem:[%s3392_s17 + $0xfc] sm:$0xf] %vm785_vm1, %v1266_v61  ;;  %v1264_v0 = vpop.permute.xlu0 %1263 }
 0x24a   : > { %2564 = vst.msk [vmem:[%s3392_s17 + $0xf8] sm:$0xf] %vm785_vm1, %v1264_v0  ;;  %1511 = vrot.lane.b32.xlu1 %v3242_v29, %s2968_s25 }
 0x24b   : > { %1509 = vrot.lane.b32.xlu0 %v3215_v19, %s2968_s25 }
 0x24c   : > { %v1335_v18 = vpop.permute.xlu1 %1334 }
 0x24d   : > { %2567 = vst.msk [vmem:[%s3408_s23 + $0x84] sm:$0xf] %vm785_vm1, %v1335_v18  ;;  %v1333_v3 = vpop.permute.xlu0 %1332 }
 0x24e   : > { %2566 = vst.msk [vmem:[%s3408_s23 + $0x80] sm:$0xf] %vm785_vm1, %v1333_v3  ;;  %1515 = vrot.lane.b32.xlu1 %v3227_v25, %s2968_s25 }
 0x24f   : > { %1513 = vrot.lane.b32.xlu0 %v3199_v12, %s2968_s25 }
 0x250   : > { %v1339_v4 = vpop.permute.xlu1 %1338 }
 0x251   : > { %2569 = vst.msk [vmem:[%s3408_s23 + $0x8c] sm:$0xf] %vm785_vm1, %v1339_v4  ;;  %v1337_v6 = vpop.permute.xlu0 %1336 }
 0x252   : > { %2568 = vst.msk [vmem:[%s3408_s23 + $0x88] sm:$0xf] %vm785_vm1, %v1337_v6  ;;  %1519 = vrot.lane.b32.xlu1 %v3325_v1, %s2968_s25 }
 0x253   : > { %1517 = vrot.lane.b32.xlu0 %v3306_v57, %s2968_s25 }
 0x254   : > { %v1343_v7 = vpop.permute.xlu1 %1342 }
 0x255   : > { %2571 = vst.msk [vmem:[%s3408_s23 + $0x94] sm:$0xf] %vm785_vm1, %v1343_v7  ;;  %v1341_v9 = vpop.permute.xlu0 %1340 }
 0x256   : > { %2570 = vst.msk [vmem:[%s3408_s23 + $0x90] sm:$0xf] %vm785_vm1, %v1341_v9  ;;  %1523 = vrot.lane.b32.xlu1 %v3319_v62, %s2968_s25 }
 0x257   : > { %1521 = vrot.lane.b32.xlu0 %v3287_v46, %s2968_s25 }
 0x258   : > { %v1347_v10 = vpop.permute.xlu1 %1346 }
 0x259   : > { %2573 = vst.msk [vmem:[%s3408_s23 + $0x9c] sm:$0xf] %vm785_vm1, %v1347_v10  ;;  %v1345_v11 = vpop.permute.xlu0 %1344 }
 0x25a   : > { %2572 = vst.msk [vmem:[%s3408_s23 + $0x98] sm:$0xf] %vm785_vm1, %v1345_v11  ;;  %1592 = vrot.lane.b32.xlu1 %v3121_v42, %s2969_s26 }
 0x25b   : > { %1590 = vrot.lane.b32.xlu0 %v3093_v30, %s2969_s26 }
 0x25c   : > { %v1351_v13 = vpop.permute.xlu1 %1350 }
 0x25d   : > { %2575 = vst.msk [vmem:[%s3408_s23 + $0xa4] sm:$0xf] %vm785_vm1, %v1351_v13  ;;  %v1349_v15 = vpop.permute.xlu0 %1348 }
 0x25e   : > { %2574 = vst.msk [vmem:[%s3408_s23 + $0xa0] sm:$0xf] %vm785_vm1, %v1349_v15  ;;  %1596 = vrot.lane.b32.xlu1 %v3109_v36, %s2969_s26 }
 0x25f   : > { %1594 = vrot.lane.b32.xlu0 %v3084_v24, %s2969_s26 }
 0x260   : > { %v1355_v16 = vpop.permute.xlu1 %1354 }
 0x261   : > { %2577 = vst.msk [vmem:[%s3408_s23 + $0xac] sm:$0xf] %vm785_vm1, %v1355_v16  ;;  %v1353_v17 = vpop.permute.xlu0 %1352 }
 0x262   : > { %2576 = vst.msk [vmem:[%s3408_s23 + $0xa8] sm:$0xf] %vm785_vm1, %v1353_v17  ;;  %1600 = vrot.lane.b32.xlu1 %v3179_v2, %s2969_s26 }
 0x263   : > { %1598 = vrot.lane.b32.xlu0 %v3151_v54, %s2969_s26 }
 0x264   : > { %v1359_v20 = vpop.permute.xlu1 %1358 }
 0x265   : > { %2579 = vst.msk [vmem:[%s3408_s23 + $0xb4] sm:$0xf] %vm785_vm1, %v1359_v20  ;;  %v1357_v22 = vpop.permute.xlu0 %1356 }
 0x266   : > { %2578 = vst.msk [vmem:[%s3408_s23 + $0xb0] sm:$0xf] %vm785_vm1, %v1357_v22  ;;  %1604 = vrot.lane.b32.xlu1 %v3165_v60, %s2969_s26 }
 0x267   : > { %1602 = vrot.lane.b32.xlu0 %v3137_v48, %s2969_s26 }
 0x268   : > { %v1363_v23 = vpop.permute.xlu1 %1362 }
 0x269   : > { %2581 = vst.msk [vmem:[%s3408_s23 + $0xbc] sm:$0xf] %vm785_vm1, %v1363_v23  ;;  %v1361_v26 = vpop.permute.xlu0 %1360 }
 0x26a   : > { %2580 = vst.msk [vmem:[%s3408_s23 + $0xb8] sm:$0xf] %vm785_vm1, %v1361_v26  ;;  %1608 = vrot.lane.b32.xlu1 %v3235_v28, %s2969_s26 }
 0x26b   : > { %1606 = vrot.lane.b32.xlu0 %v3207_v14, %s2969_s26 }
 0x26c   : > { %v1367_v31 = vpop.permute.xlu1 %1366 }
 0x26d   : > { %2583 = vst.msk [vmem:[%s3408_s23 + $0xc4] sm:$0xf] %vm785_vm1, %v1367_v31  ;;  %v1365_v32 = vpop.permute.xlu0 %1364 }
 0x26e   : > { %2582 = vst.msk [vmem:[%s3408_s23 + $0xc0] sm:$0xf] %vm785_vm1, %v1365_v32  ;;  %1612 = vrot.lane.b32.xlu1 %v3221_v21, %s2969_s26 }
 0x26f   : > { %1610 = vrot.lane.b32.xlu0 %v3193_v8, %s2969_s26 }
 0x270   : > { %v1371_v35 = vpop.permute.xlu1 %1370 }
 0x271   : > { %2585 = vst.msk [vmem:[%s3408_s23 + $0xcc] sm:$0xf] %vm785_vm1, %v1371_v35  ;;  %v1369_v37 = vpop.permute.xlu0 %1368 }
 0x272   : > { %2584 = vst.msk [vmem:[%s3408_s23 + $0xc8] sm:$0xf] %vm785_vm1, %v1369_v37  ;;  %1616 = vrot.lane.b32.xlu1 %v3304_v56, %s2969_s26 }
 0x273   : > { %1614 = vrot.lane.b32.xlu0 %v3282_v43, %s2969_s26 }
 0x274   : > { %v1375_v38 = vpop.permute.xlu1 %1374 }
 0x275   : > { %2587 = vst.msk [vmem:[%s3408_s23 + $0xd4] sm:$0xf] %vm785_vm1, %v1375_v38  ;;  %v1373_v40 = vpop.permute.xlu0 %1372 }
 0x276   : > { %2586 = vst.msk [vmem:[%s3408_s23 + $0xd0] sm:$0xf] %vm785_vm1, %v1373_v40  ;;  %1620 = vrot.lane.b32.xlu1 %v3294_v50, %s2969_s26 }
 0x277   : > { %1618 = vrot.lane.b32.xlu0 %v3273_v34, %s2969_s26 }
 0x278   : > { %v1379_v41 = vpop.permute.xlu1 %1378 }
 0x279   : > { %2589 = vst.msk [vmem:[%s3408_s23 + $0xdc] sm:$0xf] %vm785_vm1, %v1379_v41  ;;  %v1377_v44 = vpop.permute.xlu0 %1376 }
 0x27a   : > { %2588 = vst.msk [vmem:[%s3408_s23 + $0xd8] sm:$0xf] %vm785_vm1, %v1377_v44  ;;  %1624 = vrot.lane.b32.xlu1 %v3129_v45, %s2969_s26 }
 0x27b   : > { %1622 = vrot.lane.b32.xlu0 %v3101_v33, %s2969_s26 }
 0x27c   : > { %v1383_v47 = vpop.permute.xlu1 %1382 }
 0x27d   : > { %2591 = vst.msk [vmem:[%s3408_s23 + $0xe4] sm:$0xf] %vm785_vm1, %v1383_v47  ;;  %v1381_v49 = vpop.permute.xlu0 %1380 }
 0x27e   : > { %2590 = vst.msk [vmem:[%s3408_s23 + $0xe0] sm:$0xf] %vm785_vm1, %v1381_v49  ;;  %1628 = vrot.lane.b32.xlu1 %v3115_v39, %s2969_s26 }
 0x27f   : > { %1626 = vrot.lane.b32.xlu0 %v3087_v27, %s2969_s26 }
 0x280   : > { %v1387_v51 = vpop.permute.xlu1 %1386 }
 0x281   : > { %2593 = vst.msk [vmem:[%s3408_s23 + $0xec] sm:$0xf] %vm785_vm1, %v1387_v51  ;;  %v1385_v53 = vpop.permute.xlu0 %1384 }
 0x282   : > { %2592 = vst.msk [vmem:[%s3408_s23 + $0xe8] sm:$0xf] %vm785_vm1, %v1385_v53  ;;  %1632 = vrot.lane.b32.xlu1 %v3187_v5, %s2969_s26 }
 0x283   : > { %1630 = vrot.lane.b32.xlu0 %v3159_v58, %s2969_s26 }
 0x284   : > { %v1391_v55 = vpop.permute.xlu1 %1390 }
 0x285   : > { %2595 = vst.msk [vmem:[%s3408_s23 + $0xf4] sm:$0xf] %vm785_vm1, %v1391_v55  ;;  %v1389_v59 = vpop.permute.xlu0 %1388 }
 0x286   : > { %2594 = vst.msk [vmem:[%s3408_s23 + $0xf0] sm:$0xf] %vm785_vm1, %v1389_v59  ;;  %1636 = vrot.lane.b32.xlu1 %v3171_v63, %s2969_s26 }
 0x287   : > { %1634 = vrot.lane.b32.xlu0 %v3143_v52, %s2969_s26 }
 0x288   : > { %v1395_v61 = vpop.permute.xlu1 %1394 }
 0x289   : > { %2597 = vst.msk [vmem:[%s3408_s23 + $0xfc] sm:$0xf] %vm785_vm1, %v1395_v61  ;;  %v1393_v0 = vpop.permute.xlu0 %1392 }
 0x28a   : > { %2596 = vst.msk [vmem:[%s3408_s23 + $0xf8] sm:$0xf] %vm785_vm1, %v1393_v0  ;;  %1640 = vrot.lane.b32.xlu1 %v3242_v29, %s2969_s26 }
 0x28b   : > { %1638 = vrot.lane.b32.xlu0 %v3215_v19, %s2969_s26 }
 0x28c   : > { %v1464_v18 = vpop.permute.xlu1 %1463 }
 0x28d   : > { %2599 = vst.msk [vmem:[%s3081_s10 + $0x104] sm:$0xf] %vm785_vm1, %v1464_v18  ;;  %v1462_v3 = vpop.permute.xlu0 %1461 }
 0x28e   : > { %2598 = vst.msk [vmem:[%s3081_s10 + $0x100] sm:$0xf] %vm785_vm1, %v1462_v3  ;;  %1644 = vrot.lane.b32.xlu1 %v3227_v25, %s2969_s26 }
 0x28f   : > { %1642 = vrot.lane.b32.xlu0 %v3199_v12, %s2969_s26 }
 0x290   : > { %v1468_v4 = vpop.permute.xlu1 %1467 }
 0x291   : > { %2601 = vst.msk [vmem:[%s3081_s10 + $0x10c] sm:$0xf] %vm785_vm1, %v1468_v4  ;;  %v1466_v6 = vpop.permute.xlu0 %1465 }
 0x292   : > { %2600 = vst.msk [vmem:[%s3081_s10 + $0x108] sm:$0xf] %vm785_vm1, %v1466_v6  ;;  %1648 = vrot.lane.b32.xlu1 %v3325_v1, %s2969_s26 }
 0x293   : > { %1646 = vrot.lane.b32.xlu0 %v3306_v57, %s2969_s26 }
 0x294   : > { %v1472_v7 = vpop.permute.xlu1 %1471 }
 0x295   : > { %2603 = vst.msk [vmem:[%s3081_s10 + $0x114] sm:$0xf] %vm785_vm1, %v1472_v7  ;;  %v1470_v9 = vpop.permute.xlu0 %1469 }
 0x296   : > { %2602 = vst.msk [vmem:[%s3081_s10 + $0x110] sm:$0xf] %vm785_vm1, %v1470_v9  ;;  %1652 = vrot.lane.b32.xlu1 %v3319_v62, %s2969_s26 }
 0x297   : > { %1650 = vrot.lane.b32.xlu0 %v3287_v46, %s2969_s26 }
 0x298   : > { %v1476_v10 = vpop.permute.xlu1 %1475 }
 0x299   : > { %2605 = vst.msk [vmem:[%s3081_s10 + $0x11c] sm:$0xf] %vm785_vm1, %v1476_v10  ;;  %v1474_v11 = vpop.permute.xlu0 %1473 }
 0x29a   : > { %2604 = vst.msk [vmem:[%s3081_s10 + $0x118] sm:$0xf] %vm785_vm1, %v1474_v11  ;;  %1721 = vrot.lane.b32.xlu1 %v3121_v42, %s2970_s27 }
 0x29b   : > { %1719 = vrot.lane.b32.xlu0 %v3093_v30, %s2970_s27 }
 0x29c   : > { %v1480_v13 = vpop.permute.xlu1 %1479 }
 0x29d   : > { %2607 = vst.msk [vmem:[%s3081_s10 + $0x124] sm:$0xf] %vm785_vm1, %v1480_v13  ;;  %v1478_v15 = vpop.permute.xlu0 %1477 }
 0x29e   : > { %2606 = vst.msk [vmem:[%s3081_s10 + $0x120] sm:$0xf] %vm785_vm1, %v1478_v15  ;;  %1725 = vrot.lane.b32.xlu1 %v3109_v36, %s2970_s27 }
 0x29f   : > { %1723 = vrot.lane.b32.xlu0 %v3084_v24, %s2970_s27 }
 0x2a0   : > { %v1484_v16 = vpop.permute.xlu1 %1483 }
 0x2a1   : > { %2609 = vst.msk [vmem:[%s3081_s10 + $0x12c] sm:$0xf] %vm785_vm1, %v1484_v16  ;;  %v1482_v17 = vpop.permute.xlu0 %1481 }
 0x2a2   : > { %2608 = vst.msk [vmem:[%s3081_s10 + $0x128] sm:$0xf] %vm785_vm1, %v1482_v17  ;;  %1729 = vrot.lane.b32.xlu1 %v3179_v2, %s2970_s27 }
 0x2a3   : > { %1727 = vrot.lane.b32.xlu0 %v3151_v54, %s2970_s27 }
 0x2a4   : > { %v1488_v20 = vpop.permute.xlu1 %1487 }
 0x2a5   : > { %2611 = vst.msk [vmem:[%s3081_s10 + $0x134] sm:$0xf] %vm785_vm1, %v1488_v20  ;;  %v1486_v22 = vpop.permute.xlu0 %1485 }
 0x2a6   : > { %2610 = vst.msk [vmem:[%s3081_s10 + $0x130] sm:$0xf] %vm785_vm1, %v1486_v22  ;;  %1733 = vrot.lane.b32.xlu1 %v3165_v60, %s2970_s27 }
 0x2a7   : > { %1731 = vrot.lane.b32.xlu0 %v3137_v48, %s2970_s27 }
 0x2a8   : > { %v1492_v23 = vpop.permute.xlu1 %1491 }
 0x2a9   : > { %2613 = vst.msk [vmem:[%s3081_s10 + $0x13c] sm:$0xf] %vm785_vm1, %v1492_v23  ;;  %v1490_v26 = vpop.permute.xlu0 %1489 }
 0x2aa   : > { %2612 = vst.msk [vmem:[%s3081_s10 + $0x138] sm:$0xf] %vm785_vm1, %v1490_v26  ;;  %1737 = vrot.lane.b32.xlu1 %v3235_v28, %s2970_s27 }
 0x2ab   : > { %1735 = vrot.lane.b32.xlu0 %v3207_v14, %s2970_s27 }
 0x2ac   : > { %v1496_v31 = vpop.permute.xlu1 %1495 }
 0x2ad   : > { %2615 = vst.msk [vmem:[%s3081_s10 + $0x144] sm:$0xf] %vm785_vm1, %v1496_v31  ;;  %v1494_v32 = vpop.permute.xlu0 %1493 }
 0x2ae   : > { %2614 = vst.msk [vmem:[%s3081_s10 + $0x140] sm:$0xf] %vm785_vm1, %v1494_v32  ;;  %1741 = vrot.lane.b32.xlu1 %v3221_v21, %s2970_s27 }
 0x2af   : > { %1739 = vrot.lane.b32.xlu0 %v3193_v8, %s2970_s27 }
 0x2b0   : > { %v1500_v35 = vpop.permute.xlu1 %1499 }
 0x2b1   : > { %2617 = vst.msk [vmem:[%s3081_s10 + $0x14c] sm:$0xf] %vm785_vm1, %v1500_v35  ;;  %v1498_v37 = vpop.permute.xlu0 %1497 }
 0x2b2   : > { %2616 = vst.msk [vmem:[%s3081_s10 + $0x148] sm:$0xf] %vm785_vm1, %v1498_v37  ;;  %1745 = vrot.lane.b32.xlu1 %v3304_v56, %s2970_s27 }
 0x2b3   : > { %1743 = vrot.lane.b32.xlu0 %v3282_v43, %s2970_s27 }
 0x2b4   : > { %v1504_v38 = vpop.permute.xlu1 %1503 }
 0x2b5   : > { %2619 = vst.msk [vmem:[%s3081_s10 + $0x154] sm:$0xf] %vm785_vm1, %v1504_v38  ;;  %v1502_v40 = vpop.permute.xlu0 %1501 }
 0x2b6   : > { %2618 = vst.msk [vmem:[%s3081_s10 + $0x150] sm:$0xf] %vm785_vm1, %v1502_v40  ;;  %1749 = vrot.lane.b32.xlu1 %v3294_v50, %s2970_s27 }
 0x2b7   : > { %1747 = vrot.lane.b32.xlu0 %v3273_v34, %s2970_s27 }
 0x2b8   : > { %v1508_v41 = vpop.permute.xlu1 %1507 }
 0x2b9   : > { %2621 = vst.msk [vmem:[%s3081_s10 + $0x15c] sm:$0xf] %vm785_vm1, %v1508_v41  ;;  %v1506_v44 = vpop.permute.xlu0 %1505 }
 0x2ba   : > { %2620 = vst.msk [vmem:[%s3081_s10 + $0x158] sm:$0xf] %vm785_vm1, %v1506_v44  ;;  %1753 = vrot.lane.b32.xlu1 %v3129_v45, %s2970_s27 }
 0x2bb   : > { %1751 = vrot.lane.b32.xlu0 %v3101_v33, %s2970_s27 }
 0x2bc   : > { %v1512_v47 = vpop.permute.xlu1 %1511 }
 0x2bd   : > { %2623 = vst.msk [vmem:[%s3081_s10 + $0x164] sm:$0xf] %vm785_vm1, %v1512_v47  ;;  %v1510_v49 = vpop.permute.xlu0 %1509 }
 0x2be   : > { %2622 = vst.msk [vmem:[%s3081_s10 + $0x160] sm:$0xf] %vm785_vm1, %v1510_v49  ;;  %1757 = vrot.lane.b32.xlu1 %v3115_v39, %s2970_s27 }
 0x2bf   : > { %1755 = vrot.lane.b32.xlu0 %v3087_v27, %s2970_s27 }
 0x2c0   : > { %v1516_v51 = vpop.permute.xlu1 %1515 }
 0x2c1   : > { %2625 = vst.msk [vmem:[%s3081_s10 + $0x16c] sm:$0xf] %vm785_vm1, %v1516_v51  ;;  %v1514_v53 = vpop.permute.xlu0 %1513 }
 0x2c2   : > { %2624 = vst.msk [vmem:[%s3081_s10 + $0x168] sm:$0xf] %vm785_vm1, %v1514_v53  ;;  %1761 = vrot.lane.b32.xlu1 %v3187_v5, %s2970_s27 }
 0x2c3   : > { %1759 = vrot.lane.b32.xlu0 %v3159_v58, %s2970_s27 }
 0x2c4   : > { %v1520_v55 = vpop.permute.xlu1 %1519 }
 0x2c5   : > { %2627 = vst.msk [vmem:[%s3081_s10 + $0x174] sm:$0xf] %vm785_vm1, %v1520_v55  ;;  %v1518_v59 = vpop.permute.xlu0 %1517 }
 0x2c6   : > { %2626 = vst.msk [vmem:[%s3081_s10 + $0x170] sm:$0xf] %vm785_vm1, %v1518_v59  ;;  %1765 = vrot.lane.b32.xlu1 %v3171_v63, %s2970_s27 }
 0x2c7   : > { %1763 = vrot.lane.b32.xlu0 %v3143_v52, %s2970_s27 }
 0x2c8   : > { %v1524_v61 = vpop.permute.xlu1 %1523 }
 0x2c9   : > { %2629 = vst.msk [vmem:[%s3081_s10 + $0x17c] sm:$0xf] %vm785_vm1, %v1524_v61  ;;  %v1522_v0 = vpop.permute.xlu0 %1521 }
 0x2ca   : > { %2628 = vst.msk [vmem:[%s3081_s10 + $0x178] sm:$0xf] %vm785_vm1, %v1522_v0  ;;  %1769 = vrot.lane.b32.xlu1 %v3242_v29, %s2970_s27 }
 0x2cb   : > { %1767 = vrot.lane.b32.xlu0 %v3215_v19, %s2970_s27 }
 0x2cc   : > { %v1593_v18 = vpop.permute.xlu1 %1592 }
 0x2cd   : > { %2631 = vst.msk [vmem:[%s3392_s17 + $0x104] sm:$0xf] %vm785_vm1, %v1593_v18  ;;  %v1591_v3 = vpop.permute.xlu0 %1590 }
 0x2ce   : > { %2630 = vst.msk [vmem:[%s3392_s17 + $0x100] sm:$0xf] %vm785_vm1, %v1591_v3  ;;  %1773 = vrot.lane.b32.xlu1 %v3227_v25, %s2970_s27 }
 0x2cf   : > { %1771 = vrot.lane.b32.xlu0 %v3199_v12, %s2970_s27 }
 0x2d0   : > { %v1597_v4 = vpop.permute.xlu1 %1596 }
 0x2d1   : > { %2633 = vst.msk [vmem:[%s3392_s17 + $0x10c] sm:$0xf] %vm785_vm1, %v1597_v4  ;;  %v1595_v6 = vpop.permute.xlu0 %1594 }
 0x2d2   : > { %2632 = vst.msk [vmem:[%s3392_s17 + $0x108] sm:$0xf] %vm785_vm1, %v1595_v6  ;;  %1777 = vrot.lane.b32.xlu1 %v3325_v1, %s2970_s27 }
 0x2d3   : > { %1775 = vrot.lane.b32.xlu0 %v3306_v57, %s2970_s27 }
 0x2d4   : > { %v1601_v7 = vpop.permute.xlu1 %1600 }
 0x2d5   : > { %2635 = vst.msk [vmem:[%s3392_s17 + $0x114] sm:$0xf] %vm785_vm1, %v1601_v7  ;;  %v1599_v9 = vpop.permute.xlu0 %1598 }
 0x2d6   : > { %2634 = vst.msk [vmem:[%s3392_s17 + $0x110] sm:$0xf] %vm785_vm1, %v1599_v9  ;;  %1781 = vrot.lane.b32.xlu1 %v3319_v62, %s2970_s27 }
 0x2d7   : > { %1779 = vrot.lane.b32.xlu0 %v3287_v46, %s2970_s27 }
 0x2d8   : > { %v1605_v10 = vpop.permute.xlu1 %1604 }
 0x2d9   : > { %2637 = vst.msk [vmem:[%s3392_s17 + $0x11c] sm:$0xf] %vm785_vm1, %v1605_v10  ;;  %v1603_v11 = vpop.permute.xlu0 %1602 }
 0x2da   : > { %2636 = vst.msk [vmem:[%s3392_s17 + $0x118] sm:$0xf] %vm785_vm1, %v1603_v11  ;;  %1850 = vrot.lane.b32.xlu1 %v3121_v42, %s2971_s28 }
 0x2db   : > { %1848 = vrot.lane.b32.xlu0 %v3093_v30, %s2971_s28 }
 0x2dc   : > { %v1609_v13 = vpop.permute.xlu1 %1608 }
 0x2dd   : > { %2639 = vst.msk [vmem:[%s3392_s17 + $0x124] sm:$0xf] %vm785_vm1, %v1609_v13  ;;  %v1607_v15 = vpop.permute.xlu0 %1606 }
 0x2de   : > { %2638 = vst.msk [vmem:[%s3392_s17 + $0x120] sm:$0xf] %vm785_vm1, %v1607_v15  ;;  %1854 = vrot.lane.b32.xlu1 %v3109_v36, %s2971_s28 }
 0x2df   : > { %1852 = vrot.lane.b32.xlu0 %v3084_v24, %s2971_s28 }
 0x2e0   : > { %v1613_v16 = vpop.permute.xlu1 %1612 }
 0x2e1   : > { %2641 = vst.msk [vmem:[%s3392_s17 + $0x12c] sm:$0xf] %vm785_vm1, %v1613_v16  ;;  %v1611_v17 = vpop.permute.xlu0 %1610 }
 0x2e2   : > { %2640 = vst.msk [vmem:[%s3392_s17 + $0x128] sm:$0xf] %vm785_vm1, %v1611_v17  ;;  %1858 = vrot.lane.b32.xlu1 %v3179_v2, %s2971_s28 }
 0x2e3   : > { %1856 = vrot.lane.b32.xlu0 %v3151_v54, %s2971_s28 }
 0x2e4   : > { %v1617_v20 = vpop.permute.xlu1 %1616 }
 0x2e5   : > { %2643 = vst.msk [vmem:[%s3392_s17 + $0x134] sm:$0xf] %vm785_vm1, %v1617_v20  ;;  %v1615_v22 = vpop.permute.xlu0 %1614 }
 0x2e6   : > { %2642 = vst.msk [vmem:[%s3392_s17 + $0x130] sm:$0xf] %vm785_vm1, %v1615_v22  ;;  %1862 = vrot.lane.b32.xlu1 %v3165_v60, %s2971_s28 }
 0x2e7   : > { %1860 = vrot.lane.b32.xlu0 %v3137_v48, %s2971_s28 }
 0x2e8   : > { %v1621_v23 = vpop.permute.xlu1 %1620 }
 0x2e9   : > { %2645 = vst.msk [vmem:[%s3392_s17 + $0x13c] sm:$0xf] %vm785_vm1, %v1621_v23  ;;  %v1619_v26 = vpop.permute.xlu0 %1618 }
 0x2ea   : > { %2644 = vst.msk [vmem:[%s3392_s17 + $0x138] sm:$0xf] %vm785_vm1, %v1619_v26  ;;  %1866 = vrot.lane.b32.xlu1 %v3235_v28, %s2971_s28 }
 0x2eb   : > { %1864 = vrot.lane.b32.xlu0 %v3207_v14, %s2971_s28 }
 0x2ec   : > { %v1625_v31 = vpop.permute.xlu1 %1624 }
 0x2ed   : > { %2647 = vst.msk [vmem:[%s3392_s17 + $0x144] sm:$0xf] %vm785_vm1, %v1625_v31  ;;  %v1623_v32 = vpop.permute.xlu0 %1622 }
 0x2ee   : > { %2646 = vst.msk [vmem:[%s3392_s17 + $0x140] sm:$0xf] %vm785_vm1, %v1623_v32  ;;  %1870 = vrot.lane.b32.xlu1 %v3221_v21, %s2971_s28 }
 0x2ef   : > { %1868 = vrot.lane.b32.xlu0 %v3193_v8, %s2971_s28 }
 0x2f0   : > { %v1629_v35 = vpop.permute.xlu1 %1628 }
 0x2f1   : > { %2649 = vst.msk [vmem:[%s3392_s17 + $0x14c] sm:$0xf] %vm785_vm1, %v1629_v35  ;;  %v1627_v37 = vpop.permute.xlu0 %1626 }
 0x2f2   : > { %2648 = vst.msk [vmem:[%s3392_s17 + $0x148] sm:$0xf] %vm785_vm1, %v1627_v37  ;;  %1874 = vrot.lane.b32.xlu1 %v3304_v56, %s2971_s28 }
 0x2f3   : > { %1872 = vrot.lane.b32.xlu0 %v3282_v43, %s2971_s28 }
 0x2f4   : > { %v1633_v38 = vpop.permute.xlu1 %1632 }
 0x2f5   : > { %2651 = vst.msk [vmem:[%s3392_s17 + $0x154] sm:$0xf] %vm785_vm1, %v1633_v38  ;;  %v1631_v40 = vpop.permute.xlu0 %1630 }
 0x2f6   : > { %2650 = vst.msk [vmem:[%s3392_s17 + $0x150] sm:$0xf] %vm785_vm1, %v1631_v40  ;;  %1878 = vrot.lane.b32.xlu1 %v3294_v50, %s2971_s28 }
 0x2f7   : > { %1876 = vrot.lane.b32.xlu0 %v3273_v34, %s2971_s28 }
 0x2f8   : > { %v1637_v41 = vpop.permute.xlu1 %1636 }
 0x2f9   : > { %2653 = vst.msk [vmem:[%s3392_s17 + $0x15c] sm:$0xf] %vm785_vm1, %v1637_v41  ;;  %v1635_v44 = vpop.permute.xlu0 %1634 }
 0x2fa   : > { %2652 = vst.msk [vmem:[%s3392_s17 + $0x158] sm:$0xf] %vm785_vm1, %v1635_v44  ;;  %1882 = vrot.lane.b32.xlu1 %v3129_v45, %s2971_s28 }
 0x2fb   : > { %1880 = vrot.lane.b32.xlu0 %v3101_v33, %s2971_s28 }
 0x2fc   : > { %v1641_v47 = vpop.permute.xlu1 %1640 }
 0x2fd   : > { %2655 = vst.msk [vmem:[%s3392_s17 + $0x164] sm:$0xf] %vm785_vm1, %v1641_v47  ;;  %v1639_v49 = vpop.permute.xlu0 %1638 }
 0x2fe   : > { %2654 = vst.msk [vmem:[%s3392_s17 + $0x160] sm:$0xf] %vm785_vm1, %v1639_v49  ;;  %1886 = vrot.lane.b32.xlu1 %v3115_v39, %s2971_s28 }
 0x2ff   : > { %1884 = vrot.lane.b32.xlu0 %v3087_v27, %s2971_s28 }
 0x300   : > { %v1645_v51 = vpop.permute.xlu1 %1644 }
 0x301   : > { %2657 = vst.msk [vmem:[%s3392_s17 + $0x16c] sm:$0xf] %vm785_vm1, %v1645_v51  ;;  %v1643_v53 = vpop.permute.xlu0 %1642 }
 0x302   : > { %2656 = vst.msk [vmem:[%s3392_s17 + $0x168] sm:$0xf] %vm785_vm1, %v1643_v53  ;;  %1890 = vrot.lane.b32.xlu1 %v3187_v5, %s2971_s28 }
 0x303   : > { %1888 = vrot.lane.b32.xlu0 %v3159_v58, %s2971_s28 }
 0x304   : > { %v1649_v55 = vpop.permute.xlu1 %1648 }
 0x305   : > { %2659 = vst.msk [vmem:[%s3392_s17 + $0x174] sm:$0xf] %vm785_vm1, %v1649_v55  ;;  %v1647_v59 = vpop.permute.xlu0 %1646 }
 0x306   : > { %2658 = vst.msk [vmem:[%s3392_s17 + $0x170] sm:$0xf] %vm785_vm1, %v1647_v59  ;;  %1894 = vrot.lane.b32.xlu1 %v3171_v63, %s2971_s28 }
 0x307   : > { %1892 = vrot.lane.b32.xlu0 %v3143_v52, %s2971_s28 }
 0x308   : > { %v1653_v61 = vpop.permute.xlu1 %1652 }
 0x309   : > { %2661 = vst.msk [vmem:[%s3392_s17 + $0x17c] sm:$0xf] %vm785_vm1, %v1653_v61  ;;  %v1651_v0 = vpop.permute.xlu0 %1650 }
 0x30a   : > { %2660 = vst.msk [vmem:[%s3392_s17 + $0x178] sm:$0xf] %vm785_vm1, %v1651_v0  ;;  %1898 = vrot.lane.b32.xlu1 %v3242_v29, %s2971_s28 }
 0x30b   : > { %1896 = vrot.lane.b32.xlu0 %v3215_v19, %s2971_s28 }
 0x30c   : > { %v1722_v18 = vpop.permute.xlu1 %1721 }
 0x30d   : > { %2663 = vst.msk [vmem:[%s3408_s23 + $0x104] sm:$0xf] %vm785_vm1, %v1722_v18  ;;  %v1720_v3 = vpop.permute.xlu0 %1719 }
 0x30e   : > { %2662 = vst.msk [vmem:[%s3408_s23 + $0x100] sm:$0xf] %vm785_vm1, %v1720_v3  ;;  %1902 = vrot.lane.b32.xlu1 %v3227_v25, %s2971_s28 }
 0x30f   : > { %1900 = vrot.lane.b32.xlu0 %v3199_v12, %s2971_s28 }
 0x310   : > { %v1726_v4 = vpop.permute.xlu1 %1725 }
 0x311   : > { %2665 = vst.msk [vmem:[%s3408_s23 + $0x10c] sm:$0xf] %vm785_vm1, %v1726_v4  ;;  %v1724_v6 = vpop.permute.xlu0 %1723 }
 0x312   : > { %2664 = vst.msk [vmem:[%s3408_s23 + $0x108] sm:$0xf] %vm785_vm1, %v1724_v6  ;;  %1906 = vrot.lane.b32.xlu1 %v3325_v1, %s2971_s28 }
 0x313   : > { %1904 = vrot.lane.b32.xlu0 %v3306_v57, %s2971_s28 }
 0x314   : > { %v1730_v7 = vpop.permute.xlu1 %1729 }
 0x315   : > { %2667 = vst.msk [vmem:[%s3408_s23 + $0x114] sm:$0xf] %vm785_vm1, %v1730_v7  ;;  %v1728_v9 = vpop.permute.xlu0 %1727 }
 0x316   : > { %2666 = vst.msk [vmem:[%s3408_s23 + $0x110] sm:$0xf] %vm785_vm1, %v1728_v9  ;;  %1910 = vrot.lane.b32.xlu1 %v3319_v62, %s2971_s28 }
 0x317   : > { %1908 = vrot.lane.b32.xlu0 %v3287_v46, %s2971_s28 }
 0x318   : > { %v1734_v10 = vpop.permute.xlu1 %1733 }
 0x319   : > { %2669 = vst.msk [vmem:[%s3408_s23 + $0x11c] sm:$0xf] %vm785_vm1, %v1734_v10  ;;  %v1732_v11 = vpop.permute.xlu0 %1731 }
 0x31a   : > { %2668 = vst.msk [vmem:[%s3408_s23 + $0x118] sm:$0xf] %vm785_vm1, %v1732_v11  ;;  %1979 = vrot.lane.b32.xlu1 %v3121_v42, %s2972_s29 }
 0x31b   : > { %1977 = vrot.lane.b32.xlu0 %v3093_v30, %s2972_s29 }
 0x31c   : > { %v1738_v13 = vpop.permute.xlu1 %1737 }
 0x31d   : > { %2671 = vst.msk [vmem:[%s3408_s23 + $0x124] sm:$0xf] %vm785_vm1, %v1738_v13  ;;  %v1736_v15 = vpop.permute.xlu0 %1735 }
 0x31e   : > { %2670 = vst.msk [vmem:[%s3408_s23 + $0x120] sm:$0xf] %vm785_vm1, %v1736_v15  ;;  %1983 = vrot.lane.b32.xlu1 %v3109_v36, %s2972_s29 }
 0x31f   : > { %1981 = vrot.lane.b32.xlu0 %v3084_v24, %s2972_s29 }
 0x320   : > { %v1742_v16 = vpop.permute.xlu1 %1741 }
 0x321   : > { %2673 = vst.msk [vmem:[%s3408_s23 + $0x12c] sm:$0xf] %vm785_vm1, %v1742_v16  ;;  %v1740_v17 = vpop.permute.xlu0 %1739 }
 0x322   : > { %2672 = vst.msk [vmem:[%s3408_s23 + $0x128] sm:$0xf] %vm785_vm1, %v1740_v17  ;;  %1987 = vrot.lane.b32.xlu1 %v3179_v2, %s2972_s29 }
 0x323   : > { %1985 = vrot.lane.b32.xlu0 %v3151_v54, %s2972_s29 }
 0x324   : > { %v1746_v20 = vpop.permute.xlu1 %1745 }
 0x325   : > { %2675 = vst.msk [vmem:[%s3408_s23 + $0x134] sm:$0xf] %vm785_vm1, %v1746_v20  ;;  %v1744_v22 = vpop.permute.xlu0 %1743 }
 0x326   : > { %2674 = vst.msk [vmem:[%s3408_s23 + $0x130] sm:$0xf] %vm785_vm1, %v1744_v22  ;;  %1991 = vrot.lane.b32.xlu1 %v3165_v60, %s2972_s29 }
 0x327   : > { %1989 = vrot.lane.b32.xlu0 %v3137_v48, %s2972_s29 }
 0x328   : > { %v1750_v23 = vpop.permute.xlu1 %1749 }
 0x329   : > { %2677 = vst.msk [vmem:[%s3408_s23 + $0x13c] sm:$0xf] %vm785_vm1, %v1750_v23  ;;  %v1748_v26 = vpop.permute.xlu0 %1747 }
 0x32a   : > { %2676 = vst.msk [vmem:[%s3408_s23 + $0x138] sm:$0xf] %vm785_vm1, %v1748_v26  ;;  %1995 = vrot.lane.b32.xlu1 %v3235_v28, %s2972_s29 }
 0x32b   : > { %1993 = vrot.lane.b32.xlu0 %v3207_v14, %s2972_s29 }
 0x32c   : > { %v1754_v31 = vpop.permute.xlu1 %1753 }
 0x32d   : > { %2679 = vst.msk [vmem:[%s3408_s23 + $0x144] sm:$0xf] %vm785_vm1, %v1754_v31  ;;  %v1752_v32 = vpop.permute.xlu0 %1751 }
 0x32e   : > { %2678 = vst.msk [vmem:[%s3408_s23 + $0x140] sm:$0xf] %vm785_vm1, %v1752_v32  ;;  %1999 = vrot.lane.b32.xlu1 %v3221_v21, %s2972_s29 }
 0x32f   : > { %1997 = vrot.lane.b32.xlu0 %v3193_v8, %s2972_s29 }
 0x330   : > { %v1758_v35 = vpop.permute.xlu1 %1757 }
 0x331   : > { %2681 = vst.msk [vmem:[%s3408_s23 + $0x14c] sm:$0xf] %vm785_vm1, %v1758_v35  ;;  %v1756_v37 = vpop.permute.xlu0 %1755 }
 0x332   : > { %2680 = vst.msk [vmem:[%s3408_s23 + $0x148] sm:$0xf] %vm785_vm1, %v1756_v37  ;;  %2003 = vrot.lane.b32.xlu1 %v3304_v56, %s2972_s29 }
 0x333   : > { %2001 = vrot.lane.b32.xlu0 %v3282_v43, %s2972_s29 }
 0x334   : > { %v1762_v38 = vpop.permute.xlu1 %1761 }
 0x335   : > { %2683 = vst.msk [vmem:[%s3408_s23 + $0x154] sm:$0xf] %vm785_vm1, %v1762_v38  ;;  %v1760_v40 = vpop.permute.xlu0 %1759 }
 0x336   : > { %2682 = vst.msk [vmem:[%s3408_s23 + $0x150] sm:$0xf] %vm785_vm1, %v1760_v40  ;;  %2007 = vrot.lane.b32.xlu1 %v3294_v50, %s2972_s29 }
 0x337   : > { %2005 = vrot.lane.b32.xlu0 %v3273_v34, %s2972_s29 }
 0x338   : > { %v1766_v41 = vpop.permute.xlu1 %1765 }
 0x339   : > { %2685 = vst.msk [vmem:[%s3408_s23 + $0x15c] sm:$0xf] %vm785_vm1, %v1766_v41  ;;  %v1764_v44 = vpop.permute.xlu0 %1763 }
 0x33a   : > { %2684 = vst.msk [vmem:[%s3408_s23 + $0x158] sm:$0xf] %vm785_vm1, %v1764_v44  ;;  %2011 = vrot.lane.b32.xlu1 %v3129_v45, %s2972_s29 }
 0x33b   : > { %2009 = vrot.lane.b32.xlu0 %v3101_v33, %s2972_s29 }
 0x33c   : > { %v1770_v47 = vpop.permute.xlu1 %1769 }
 0x33d   : > { %2687 = vst.msk [vmem:[%s3408_s23 + $0x164] sm:$0xf] %vm785_vm1, %v1770_v47  ;;  %v1768_v49 = vpop.permute.xlu0 %1767 }
 0x33e   : > { %2686 = vst.msk [vmem:[%s3408_s23 + $0x160] sm:$0xf] %vm785_vm1, %v1768_v49  ;;  %2015 = vrot.lane.b32.xlu1 %v3115_v39, %s2972_s29 }
 0x33f   : > { %2013 = vrot.lane.b32.xlu0 %v3087_v27, %s2972_s29 }
 0x340   : > { %v1774_v51 = vpop.permute.xlu1 %1773 }
 0x341   : > { %2689 = vst.msk [vmem:[%s3408_s23 + $0x16c] sm:$0xf] %vm785_vm1, %v1774_v51  ;;  %v1772_v53 = vpop.permute.xlu0 %1771 }
 0x342   : > { %2688 = vst.msk [vmem:[%s3408_s23 + $0x168] sm:$0xf] %vm785_vm1, %v1772_v53  ;;  %2019 = vrot.lane.b32.xlu1 %v3187_v5, %s2972_s29 }
 0x343   : > { %2017 = vrot.lane.b32.xlu0 %v3159_v58, %s2972_s29 }
 0x344   : > { %v1778_v55 = vpop.permute.xlu1 %1777 }
 0x345   : > { %2691 = vst.msk [vmem:[%s3408_s23 + $0x174] sm:$0xf] %vm785_vm1, %v1778_v55  ;;  %v1776_v59 = vpop.permute.xlu0 %1775 }
 0x346   : > { %2690 = vst.msk [vmem:[%s3408_s23 + $0x170] sm:$0xf] %vm785_vm1, %v1776_v59  ;;  %2023 = vrot.lane.b32.xlu1 %v3171_v63, %s2972_s29 }
 0x347   : > { %2021 = vrot.lane.b32.xlu0 %v3143_v52, %s2972_s29 }
 0x348   : > { %v1782_v61 = vpop.permute.xlu1 %1781 }
 0x349   : > { %2693 = vst.msk [vmem:[%s3408_s23 + $0x17c] sm:$0xf] %vm785_vm1, %v1782_v61  ;;  %v1780_v0 = vpop.permute.xlu0 %1779 }
 0x34a   : > { %2692 = vst.msk [vmem:[%s3408_s23 + $0x178] sm:$0xf] %vm785_vm1, %v1780_v0  ;;  %2027 = vrot.lane.b32.xlu1 %v3242_v29, %s2972_s29 }
 0x34b   : > { %2025 = vrot.lane.b32.xlu0 %v3215_v19, %s2972_s29 }
 0x34c   : > { %v1851_v18 = vpop.permute.xlu1 %1850 }
 0x34d   : > { %2695 = vst.msk [vmem:[%s3081_s10 + $0x184] sm:$0xf] %vm785_vm1, %v1851_v18  ;;  %v1849_v3 = vpop.permute.xlu0 %1848 }
 0x34e   : > { %2694 = vst.msk [vmem:[%s3081_s10 + $0x180] sm:$0xf] %vm785_vm1, %v1849_v3  ;;  %2031 = vrot.lane.b32.xlu1 %v3227_v25, %s2972_s29 }
 0x34f   : > { %2029 = vrot.lane.b32.xlu0 %v3199_v12, %s2972_s29 }
 0x350   : > { %v1855_v4 = vpop.permute.xlu1 %1854 }
 0x351   : > { %2697 = vst.msk [vmem:[%s3081_s10 + $0x18c] sm:$0xf] %vm785_vm1, %v1855_v4  ;;  %v1853_v6 = vpop.permute.xlu0 %1852 }
 0x352   : > { %2696 = vst.msk [vmem:[%s3081_s10 + $0x188] sm:$0xf] %vm785_vm1, %v1853_v6  ;;  %2035 = vrot.lane.b32.xlu1 %v3325_v1, %s2972_s29 }
 0x353   : > { %2033 = vrot.lane.b32.xlu0 %v3306_v57, %s2972_s29 }
 0x354   : > { %v1859_v7 = vpop.permute.xlu1 %1858 }
 0x355   : > { %2699 = vst.msk [vmem:[%s3081_s10 + $0x194] sm:$0xf] %vm785_vm1, %v1859_v7  ;;  %v1857_v9 = vpop.permute.xlu0 %1856 }
 0x356   : > { %2698 = vst.msk [vmem:[%s3081_s10 + $0x190] sm:$0xf] %vm785_vm1, %v1857_v9  ;;  %2039 = vrot.lane.b32.xlu1 %v3319_v62, %s2972_s29 }
 0x357   : > { %2037 = vrot.lane.b32.xlu0 %v3287_v46, %s2972_s29 }
 0x358   : > { %v1863_v10 = vpop.permute.xlu1 %1862 }
 0x359   : > { %2701 = vst.msk [vmem:[%s3081_s10 + $0x19c] sm:$0xf] %vm785_vm1, %v1863_v10  ;;  %v1861_v11 = vpop.permute.xlu0 %1860 }
 0x35a   : > { %2700 = vst.msk [vmem:[%s3081_s10 + $0x198] sm:$0xf] %vm785_vm1, %v1861_v11  ;;  %2108 = vrot.lane.b32.xlu1 %v3121_v42, %s2973_s30 }
 0x35b   : > { %2106 = vrot.lane.b32.xlu0 %v3093_v30, %s2973_s30 }
 0x35c   : > { %v1867_v13 = vpop.permute.xlu1 %1866 }
 0x35d   : > { %2703 = vst.msk [vmem:[%s3081_s10 + $0x1a4] sm:$0xf] %vm785_vm1, %v1867_v13  ;;  %v1865_v15 = vpop.permute.xlu0 %1864 }
 0x35e   : > { %2702 = vst.msk [vmem:[%s3081_s10 + $0x1a0] sm:$0xf] %vm785_vm1, %v1865_v15  ;;  %2112 = vrot.lane.b32.xlu1 %v3109_v36, %s2973_s30 }
 0x35f   : > { %2110 = vrot.lane.b32.xlu0 %v3084_v24, %s2973_s30 }
 0x360   : > { %v1871_v16 = vpop.permute.xlu1 %1870 }
 0x361   : > { %2705 = vst.msk [vmem:[%s3081_s10 + $0x1ac] sm:$0xf] %vm785_vm1, %v1871_v16  ;;  %v1869_v42 = vpop.permute.xlu0 %1868 }
 0x362   : > { %2704 = vst.msk [vmem:[%s3081_s10 + $0x1a8] sm:$0xf] %vm785_vm1, %v1869_v42  ;;  %2116 = vrot.lane.b32.xlu1 %v3179_v2, %s2973_s30 }
 0x363   : > { %2114 = vrot.lane.b32.xlu0 %v3151_v54, %s2973_s30 }
 0x364   : > { %v1875_v30 = vpop.permute.xlu1 %1874 }
 0x365   : > { %2707 = vst.msk [vmem:[%s3081_s10 + $0x1b4] sm:$0xf] %vm785_vm1, %v1875_v30  ;;  %v1873_v36 = vpop.permute.xlu0 %1872 }
 0x366   : > { %2706 = vst.msk [vmem:[%s3081_s10 + $0x1b0] sm:$0xf] %vm785_vm1, %v1873_v36  ;;  %2120 = vrot.lane.b32.xlu1 %v3165_v60, %s2973_s30 }
 0x367   : > { %2118 = vrot.lane.b32.xlu0 %v3137_v48, %s2973_s30 }
 0x368   : > { %v1879_v24 = vpop.permute.xlu1 %1878 }
 0x369   : > { %2709 = vst.msk [vmem:[%s3081_s10 + $0x1bc] sm:$0xf] %vm785_vm1, %v1879_v24  ;;  %v1877_v2 = vpop.permute.xlu0 %1876 }
 0x36a   : > { %2708 = vst.msk [vmem:[%s3081_s10 + $0x1b8] sm:$0xf] %vm785_vm1, %v1877_v2  ;;  %2124 = vrot.lane.b32.xlu1 %v3235_v28, %s2973_s30 }
 0x36b   : > { %2122 = vrot.lane.b32.xlu0 %v3207_v14, %s2973_s30 }
 0x36c   : > { %v1883_v54 = vpop.permute.xlu1 %1882 }
 0x36d   : > { %2711 = vst.msk [vmem:[%s3081_s10 + $0x1c4] sm:$0xf] %vm785_vm1, %v1883_v54  ;;  %v1881_v60 = vpop.permute.xlu0 %1880 }
 0x36e   : > { %2710 = vst.msk [vmem:[%s3081_s10 + $0x1c0] sm:$0xf] %vm785_vm1, %v1881_v60  ;;  %2128 = vrot.lane.b32.xlu1 %v3221_v21, %s2973_s30 }
 0x36f   : > { %2126 = vrot.lane.b32.xlu0 %v3193_v8, %s2973_s30 }
 0x370   : > { %v1887_v48 = vpop.permute.xlu1 %1886 }
 0x371   : > { %2713 = vst.msk [vmem:[%s3081_s10 + $0x1cc] sm:$0xf] %vm785_vm1, %v1887_v48  ;;  %v1885_v28 = vpop.permute.xlu0 %1884 }
 0x372   : > { %2712 = vst.msk [vmem:[%s3081_s10 + $0x1c8] sm:$0xf] %vm785_vm1, %v1885_v28  ;;  %2132 = vrot.lane.b32.xlu1 %v3304_v56, %s2973_s30 }
 0x373   : > { %2130 = vrot.lane.b32.xlu0 %v3282_v43, %s2973_s30 }
 0x374   : > { %v1891_v14 = vpop.permute.xlu1 %1890 }
 0x375   : > { %2715 = vst.msk [vmem:[%s3081_s10 + $0x1d4] sm:$0xf] %vm785_vm1, %v1891_v14  ;;  %v1889_v21 = vpop.permute.xlu0 %1888 }
 0x376   : > { %2714 = vst.msk [vmem:[%s3081_s10 + $0x1d0] sm:$0xf] %vm785_vm1, %v1889_v21  ;;  %2136 = vrot.lane.b32.xlu1 %v3294_v50, %s2973_s30 }
 0x377   : > { %2134 = vrot.lane.b32.xlu0 %v3273_v34, %s2973_s30 }
 0x378   : > { %v1895_v8 = vpop.permute.xlu1 %1894 }
 0x379   : > { %2717 = vst.msk [vmem:[%s3081_s10 + $0x1dc] sm:$0xf] %vm785_vm1, %v1895_v8  ;;  %v1893_v56 = vpop.permute.xlu0 %1892 }
 0x37a   : > { %2716 = vst.msk [vmem:[%s3081_s10 + $0x1d8] sm:$0xf] %vm785_vm1, %v1893_v56  ;;  %2140 = vrot.lane.b32.xlu1 %v3129_v45, %s2973_s30 }
 0x37b   : > { %2138 = vrot.lane.b32.xlu0 %v3101_v33, %s2973_s30 }
 0x37c   : > { %v1899_v43 = vpop.permute.xlu1 %1898 }
 0x37d   : > { %2719 = vst.msk [vmem:[%s3081_s10 + $0x1e4] sm:$0xf] %vm785_vm1, %v1899_v43  ;;  %v1897_v50 = vpop.permute.xlu0 %1896 }
 0x37e   : > { %2718 = vst.msk [vmem:[%s3081_s10 + $0x1e0] sm:$0xf] %vm785_vm1, %v1897_v50  ;;  %2144 = vrot.lane.b32.xlu1 %v3115_v39, %s2973_s30 }
 0x37f   : > { %2142 = vrot.lane.b32.xlu0 %v3087_v27, %s2973_s30 }
 0x380   : > { %v1903_v34 = vpop.permute.xlu1 %1902 }
 0x381   : > { %2721 = vst.msk [vmem:[%s3081_s10 + $0x1ec] sm:$0xf] %vm785_vm1, %v1903_v34  ;;  %v1901_v45 = vpop.permute.xlu0 %1900 }
 0x382   : > { %2720 = vst.msk [vmem:[%s3081_s10 + $0x1e8] sm:$0xf] %vm785_vm1, %v1901_v45  ;;  %2148 = vrot.lane.b32.xlu1 %v3187_v5, %s2973_s30 }
 0x383   : > { %2146 = vrot.lane.b32.xlu0 %v3159_v58, %s2973_s30 }
 0x384   : > { %v1907_v33 = vpop.permute.xlu1 %1906 }
 0x385   : > { %2723 = vst.msk [vmem:[%s3081_s10 + $0x1f4] sm:$0xf] %vm785_vm1, %v1907_v33  ;;  %v1905_v39 = vpop.permute.xlu0 %1904 }
 0x386   : > { %2722 = vst.msk [vmem:[%s3081_s10 + $0x1f0] sm:$0xf] %vm785_vm1, %v1905_v39  ;;  %2152 = vrot.lane.b32.xlu1 %v3171_v63, %s2973_s30 }
 0x387   : > { %2150 = vrot.lane.b32.xlu0 %v3143_v52, %s2973_s30 }
 0x388   : > { %v1911_v27 = vpop.permute.xlu1 %1910 }
 0x389   : > { %2725 = vst.msk [vmem:[%s3081_s10 + $0x1fc] sm:$0xf] %vm785_vm1, %v1911_v27  ;;  %v1909_v5 = vpop.permute.xlu0 %1908 }
 0x38a   : > { %2724 = vst.msk [vmem:[%s3081_s10 + $0x1f8] sm:$0xf] %vm785_vm1, %v1909_v5  ;;  %2156 = vrot.lane.b32.xlu1 %v3242_v29, %s2973_s30 }
 0x38b   : > { %2154 = vrot.lane.b32.xlu0 %v3215_v19, %s2973_s30 }
 0x38c   : > { %v1980_v58 = vpop.permute.xlu1 %1979 }
 0x38d   : > { %2727 = vst.msk [vmem:[%s3392_s17 + $0x184] sm:$0xf] %vm785_vm1, %v1980_v58  ;;  %v1978_v63 = vpop.permute.xlu0 %1977 }
 0x38e   : > { %2726 = vst.msk [vmem:[%s3392_s17 + $0x180] sm:$0xf] %vm785_vm1, %v1978_v63  ;;  %2160 = vrot.lane.b32.xlu1 %v3227_v25, %s2973_s30 }
 0x38f   : > { %2158 = vrot.lane.b32.xlu0 %v3199_v12, %s2973_s30 }
 0x390   : > { %v1984_v52 = vpop.permute.xlu1 %1983 }
 0x391   : > { %2729 = vst.msk [vmem:[%s3392_s17 + $0x18c] sm:$0xf] %vm785_vm1, %v1984_v52  ;;  %v1982_v19 = vpop.permute.xlu0 %1981 }
 0x392   : > { %2728 = vst.msk [vmem:[%s3392_s17 + $0x188] sm:$0xf] %vm785_vm1, %v1982_v19  ;;  %2164 = vrot.lane.b32.xlu1 %v3325_v1, %s2973_s30 }
 0x393   : > { %2162 = vrot.lane.b32.xlu0 %v3306_v57, %s2973_s30 }
 0x394   : > { %v1988_v25 = vpop.permute.xlu1 %1987 }
 0x395   : > { %2731 = vst.msk [vmem:[%s3392_s17 + $0x194] sm:$0xf] %vm785_vm1, %v1988_v25  ;;  %v1986_v12 = vpop.permute.xlu0 %1985 }
 0x396   : > { %2730 = vst.msk [vmem:[%s3392_s17 + $0x190] sm:$0xf] %vm785_vm1, %v1986_v12  ;;  %2168 = vrot.lane.b32.xlu1 %v3319_v62, %s2973_s30 }
 0x397   : > { %2166 = vrot.lane.b32.xlu0 %v3287_v46, %s2973_s30 }
 0x398   : > { %v1992_v29 = vpop.permute.xlu1 %1991 }
 0x399   : > { %2733 = vst.msk [vmem:[%s3392_s17 + $0x19c] sm:$0xf] %vm785_vm1, %v1992_v29  ;;  %v1990_v57 = vpop.permute.xlu0 %1989 }
 0x39a   : > { %2732 = vst.msk [vmem:[%s3392_s17 + $0x198] sm:$0xf] %vm785_vm1, %v1990_v57 }
 0x39c   : > { %v1996_v1 = vpop.permute.xlu1 %1995 }
 0x39d   : > { %2735 = vst.msk [vmem:[%s3392_s17 + $0x1a4] sm:$0xf] %vm785_vm1, %v1996_v1  ;;  %v1994_v17 = vpop.permute.xlu0 %1993 }
 0x39e   : > { %2734 = vst.msk [vmem:[%s3392_s17 + $0x1a0] sm:$0xf] %vm785_vm1, %v1994_v17 }
 0x3a0   : > { %v2000_v62 = vpop.permute.xlu1 %1999 }
 0x3a1   : > { %2737 = vst.msk [vmem:[%s3392_s17 + $0x1ac] sm:$0xf] %vm785_vm1, %v2000_v62  ;;  %v1998_v46 = vpop.permute.xlu0 %1997 }
 0x3a2   : > { %2736 = vst.msk [vmem:[%s3392_s17 + $0x1a8] sm:$0xf] %vm785_vm1, %v1998_v46 }
 0x3a4   : > { %v2004_v20 = vpop.permute.xlu1 %2003 }
 0x3a5   : > { %2739 = vst.msk [vmem:[%s3392_s17 + $0x1b4] sm:$0xf] %vm785_vm1, %v2004_v20  ;;  %v2002_v22 = vpop.permute.xlu0 %2001 }
 0x3a6   : > { %2738 = vst.msk [vmem:[%s3392_s17 + $0x1b0] sm:$0xf] %vm785_vm1, %v2002_v22 }
 0x3a8   : > { %v2008_v23 = vpop.permute.xlu1 %2007 }
 0x3a9   : > { %2741 = vst.msk [vmem:[%s3392_s17 + $0x1bc] sm:$0xf] %vm785_vm1, %v2008_v23  ;;  %v2006_v26 = vpop.permute.xlu0 %2005 }
 0x3aa   : > { %2740 = vst.msk [vmem:[%s3392_s17 + $0x1b8] sm:$0xf] %vm785_vm1, %v2006_v26 }
 0x3ac   : > { %v2012_v31 = vpop.permute.xlu1 %2011 }
 0x3ad   : > { %2743 = vst.msk [vmem:[%s3392_s17 + $0x1c4] sm:$0xf] %vm785_vm1, %v2012_v31  ;;  %v2010_v32 = vpop.permute.xlu0 %2009 }
 0x3ae   : > { %2742 = vst.msk [vmem:[%s3392_s17 + $0x1c0] sm:$0xf] %vm785_vm1, %v2010_v32 }
 0x3b0   : > { %v2016_v35 = vpop.permute.xlu1 %2015 }
 0x3b1   : > { %2745 = vst.msk [vmem:[%s3392_s17 + $0x1cc] sm:$0xf] %vm785_vm1, %v2016_v35  ;;  %v2014_v37 = vpop.permute.xlu0 %2013 }
 0x3b2   : > { %2744 = vst.msk [vmem:[%s3392_s17 + $0x1c8] sm:$0xf] %vm785_vm1, %v2014_v37 }
 0x3b4   : > { %v2020_v38 = vpop.permute.xlu1 %2019 }
 0x3b5   : > { %2747 = vst.msk [vmem:[%s3392_s17 + $0x1d4] sm:$0xf] %vm785_vm1, %v2020_v38  ;;  %v2018_v40 = vpop.permute.xlu0 %2017 }
 0x3b6   : > { %2746 = vst.msk [vmem:[%s3392_s17 + $0x1d0] sm:$0xf] %vm785_vm1, %v2018_v40 }
 0x3b8   : > { %v2024_v41 = vpop.permute.xlu1 %2023 }
 0x3b9   : > { %2749 = vst.msk [vmem:[%s3392_s17 + $0x1dc] sm:$0xf] %vm785_vm1, %v2024_v41  ;;  %v2022_v44 = vpop.permute.xlu0 %2021 }
 0x3ba   : > { %2748 = vst.msk [vmem:[%s3392_s17 + $0x1d8] sm:$0xf] %vm785_vm1, %v2022_v44 }
 0x3bc   : > { %v2028_v47 = vpop.permute.xlu1 %2027 }
 0x3bd   : > { %2751 = vst.msk [vmem:[%s3392_s17 + $0x1e4] sm:$0xf] %vm785_vm1, %v2028_v47  ;;  %v2026_v49 = vpop.permute.xlu0 %2025 }
 0x3be   : > { %2750 = vst.msk [vmem:[%s3392_s17 + $0x1e0] sm:$0xf] %vm785_vm1, %v2026_v49 }
 0x3c0   : > { %v2032_v51 = vpop.permute.xlu1 %2031 }
 0x3c1   : > { %2753 = vst.msk [vmem:[%s3392_s17 + $0x1ec] sm:$0xf] %vm785_vm1, %v2032_v51  ;;  %v2030_v53 = vpop.permute.xlu0 %2029 }
 0x3c2   : > { %2752 = vst.msk [vmem:[%s3392_s17 + $0x1e8] sm:$0xf] %vm785_vm1, %v2030_v53 }
 0x3c4   : > { %v2036_v55 = vpop.permute.xlu1 %2035 }
 0x3c5   : > { %2755 = vst.msk [vmem:[%s3392_s17 + $0x1f4] sm:$0xf] %vm785_vm1, %v2036_v55  ;;  %v2034_v59 = vpop.permute.xlu0 %2033 }
 0x3c6   : > { %2754 = vst.msk [vmem:[%s3392_s17 + $0x1f0] sm:$0xf] %vm785_vm1, %v2034_v59 }
 0x3c8   : > { %v2040_v61 = vpop.permute.xlu1 %2039 }
 0x3c9   : > { %2757 = vst.msk [vmem:[%s3392_s17 + $0x1fc] sm:$0xf] %vm785_vm1, %v2040_v61  ;;  %v2038_v0 = vpop.permute.xlu0 %2037 }
 0x3ca   : > { %2756 = vst.msk [vmem:[%s3392_s17 + $0x1f8] sm:$0xf] %vm785_vm1, %v2038_v0 }
 0x3cc   : > { %v2109_v18 = vpop.permute.xlu1 %2108 }
 0x3cd   : > { %2759 = vst.msk [vmem:[%s3408_s23 + $0x184] sm:$0xf] %vm785_vm1, %v2109_v18  ;;  %v2107_v3 = vpop.permute.xlu0 %2106 }
 0x3ce   : > { %2758 = vst.msk [vmem:[%s3408_s23 + $0x180] sm:$0xf] %vm785_vm1, %v2107_v3 }
 0x3d0   : > { %v2113_v4 = vpop.permute.xlu1 %2112 }
 0x3d1   : > { %2761 = vst.msk [vmem:[%s3408_s23 + $0x18c] sm:$0xf] %vm785_vm1, %v2113_v4  ;;  %v2111_v6 = vpop.permute.xlu0 %2110 }
 0x3d2   : > { %2760 = vst.msk [vmem:[%s3408_s23 + $0x188] sm:$0xf] %vm785_vm1, %v2111_v6 }
 0x3d4   : > { %v2117_v7 = vpop.permute.xlu1 %2116 }
 0x3d5   : > { %2763 = vst.msk [vmem:[%s3408_s23 + $0x194] sm:$0xf] %vm785_vm1, %v2117_v7  ;;  %v2115_v9 = vpop.permute.xlu0 %2114 }
 0x3d6   : > { %2762 = vst.msk [vmem:[%s3408_s23 + $0x190] sm:$0xf] %vm785_vm1, %v2115_v9 }
 0x3d8   : > { %v2121_v10 = vpop.permute.xlu1 %2120 }
 0x3d9   : > { %2765 = vst.msk [vmem:[%s3408_s23 + $0x19c] sm:$0xf] %vm785_vm1, %v2121_v10  ;;  %v2119_v11 = vpop.permute.xlu0 %2118 }
 0x3da   : > { %2764 = vst.msk [vmem:[%s3408_s23 + $0x198] sm:$0xf] %vm785_vm1, %v2119_v11 }
 0x3dc   : > { %v2125_v13 = vpop.permute.xlu1 %2124 }
 0x3dd   : > { %2767 = vst.msk [vmem:[%s3408_s23 + $0x1a4] sm:$0xf] %vm785_vm1, %v2125_v13  ;;  %v2123_v15 = vpop.permute.xlu0 %2122 }
 0x3de   : > { %2766 = vst.msk [vmem:[%s3408_s23 + $0x1a0] sm:$0xf] %vm785_vm1, %v2123_v15 }
 0x3e0   : > { %v2129_v16 = vpop.permute.xlu1 %2128 }
 0x3e1   : > { %2769 = vst.msk [vmem:[%s3408_s23 + $0x1ac] sm:$0xf] %vm785_vm1, %v2129_v16  ;;  %v2127_v42 = vpop.permute.xlu0 %2126 }
 0x3e2   : > { %2768 = vst.msk [vmem:[%s3408_s23 + $0x1a8] sm:$0xf] %vm785_vm1, %v2127_v42 }
 0x3e4   : > { %v2133_v30 = vpop.permute.xlu1 %2132 }
 0x3e5   : > { %2771 = vst.msk [vmem:[%s3408_s23 + $0x1b4] sm:$0xf] %vm785_vm1, %v2133_v30  ;;  %v2131_v36 = vpop.permute.xlu0 %2130 }
 0x3e6   : > { %2770 = vst.msk [vmem:[%s3408_s23 + $0x1b0] sm:$0xf] %vm785_vm1, %v2131_v36 }
 0x3e8   : > { %v2137_v24 = vpop.permute.xlu1 %2136 }
 0x3e9   : > { %2773 = vst.msk [vmem:[%s3408_s23 + $0x1bc] sm:$0xf] %vm785_vm1, %v2137_v24  ;;  %v2135_v2 = vpop.permute.xlu0 %2134 }
 0x3ea   : > { %2772 = vst.msk [vmem:[%s3408_s23 + $0x1b8] sm:$0xf] %vm785_vm1, %v2135_v2 }
 0x3ec   : > { %v2141_v54 = vpop.permute.xlu1 %2140 }
 0x3ed   : > { %2775 = vst.msk [vmem:[%s3408_s23 + $0x1c4] sm:$0xf] %vm785_vm1, %v2141_v54  ;;  %v2139_v60 = vpop.permute.xlu0 %2138 }
 0x3ee   : > { %2774 = vst.msk [vmem:[%s3408_s23 + $0x1c0] sm:$0xf] %vm785_vm1, %v2139_v60 }
 0x3f0   : > { %v2145_v48 = vpop.permute.xlu1 %2144 }
 0x3f1   : > { %2777 = vst.msk [vmem:[%s3408_s23 + $0x1cc] sm:$0xf] %vm785_vm1, %v2145_v48  ;;  %v2143_v28 = vpop.permute.xlu0 %2142 }
 0x3f2   : > { %2776 = vst.msk [vmem:[%s3408_s23 + $0x1c8] sm:$0xf] %vm785_vm1, %v2143_v28 }
 0x3f4   : > { %v2149_v14 = vpop.permute.xlu1 %2148 }
 0x3f5   : > { %2779 = vst.msk [vmem:[%s3408_s23 + $0x1d4] sm:$0xf] %vm785_vm1, %v2149_v14  ;;  %v2147_v21 = vpop.permute.xlu0 %2146 }
 0x3f6   : > { %2778 = vst.msk [vmem:[%s3408_s23 + $0x1d0] sm:$0xf] %vm785_vm1, %v2147_v21 }
 0x3f8   : > { %v2153_v8 = vpop.permute.xlu1 %2152 }
 0x3f9   : > { %2781 = vst.msk [vmem:[%s3408_s23 + $0x1dc] sm:$0xf] %vm785_vm1, %v2153_v8  ;;  %v2151_v56 = vpop.permute.xlu0 %2150 }
 0x3fa   : > { %2780 = vst.msk [vmem:[%s3408_s23 + $0x1d8] sm:$0xf] %vm785_vm1, %v2151_v56 }
 0x3fc   : > { %v2157_v43 = vpop.permute.xlu1 %2156 }
 0x3fd   : > { %2783 = vst.msk [vmem:[%s3408_s23 + $0x1e4] sm:$0xf] %vm785_vm1, %v2157_v43  ;;  %v2155_v50 = vpop.permute.xlu0 %2154 }
 0x3fe   : > { %2782 = vst.msk [vmem:[%s3408_s23 + $0x1e0] sm:$0xf] %vm785_vm1, %v2155_v50 }
 0x400   : > { %v2161_v34 = vpop.permute.xlu1 %2160 }
 0x401   : > { %2785 = vst.msk [vmem:[%s3408_s23 + $0x1ec] sm:$0xf] %vm785_vm1, %v2161_v34  ;;  %v2159_v45 = vpop.permute.xlu0 %2158 }
 0x402   : > { %2784 = vst.msk [vmem:[%s3408_s23 + $0x1e8] sm:$0xf] %vm785_vm1, %v2159_v45 }
 0x404   : > { %v2165_v33 = vpop.permute.xlu1 %2164 }
 0x405   : > { %2787 = vst.msk [vmem:[%s3408_s23 + $0x1f4] sm:$0xf] %vm785_vm1, %v2165_v33  ;;  %v2163_v39 = vpop.permute.xlu0 %2162 }
 0x406   : > { %2786 = vst.msk [vmem:[%s3408_s23 + $0x1f0] sm:$0xf] %vm785_vm1, %v2163_v39 }
 0x408   : > { %v2169_v27 = vpop.permute.xlu1 %2168 }
 0x409   : > { %2789 = vst.msk [vmem:[%s3408_s23 + $0x1fc] sm:$0xf] %vm785_vm1, %v2169_v27  ;;  %v2167_v5 = vpop.permute.xlu0 %2166 }
 0x40a   : > { %2788 = vst.msk [vmem:[%s3408_s23 + $0x1f8] sm:$0xf] %vm785_vm1, %v2167_v5 }
 0x40b PF: > { %s16_s20 = sadd.s32 1, %s2961_s20   ;;  %s4709_s18 = smov %s2957_s19 }
 0x40c   : > { %p13_p5 = scmp.ge.s32.totalorder %s16_s20, 4   ;;  %s4710_s19 = smov %s4712_s21 }
 0x40e   :  { %15 = sbr.rel (!%p13_p5) target bundleno = 2 (0x2), region = 95 }

</bundles_post_ra>
